<compile_context>
chip_gen: v5e
topology: v5e:2x2
jax: 0.10.0
libtpu: 0.0.40
codegen_flags: <defaults>
</compile_context>

<pallas_src>
import functools
import math

import jax
import jax.numpy as jnp
from jax.experimental import pallas as pl
from jax.experimental.pallas import tpu as pltpu

LANE = 128
SUBLANE = 8
VMEM_LIMIT = 32 * 1024 * 1024  # explicit scoped-VMEM budget, safe on v5e/v6e/v7x


# -----------------------------------------------------------------------------
# small helpers
# -----------------------------------------------------------------------------
def _round_up(x, m):
    return ((x + m - 1) // m) * m


def _tile_rows(extent, target=256):
    """Row (sublane) tile: largest multiple of 8 dividing extent, <= target.
    Prefers >=2 tiles on small extents so megacore gets a parallel axis."""
    if extent % SUBLANE != 0:
        return extent
    cap = min(target, extent)
    if 2 * SUBLANE <= extent <= 2 * target:
        cap = min(cap, max(SUBLANE, extent // 2))
    best = SUBLANE
    for t in range(SUBLANE, cap + 1, SUBLANE):
        if extent % t == 0:
            best = t
    return best


def _tile_lanes(extent, target=256):
    """Lane tile: largest multiple of 128 dividing extent, <= target."""
    if extent % LANE != 0:
        return extent
    cap = min(target, extent)
    best = LANE
    for t in range(LANE, cap + 1, LANE):
        if extent % t == 0:
            best = t
    return best


def _pad1(v, n):
    return jnp.pad(v, (0, n - v.shape[0]))


def _pad2(w, rows, cols):
    return jnp.pad(w, ((0, rows - w.shape[0]), (0, cols - w.shape[1])))


# -----------------------------------------------------------------------------
# Pallas kernels
# -----------------------------------------------------------------------------
def _ln_linear_kernel(x_ref, g_ref, b_ref, w_ref, bias_ref, o_ref, *,
                      apply_ln, d_real, activation, eps):
    """Fused (optional masked LayerNorm) + matmul + bias + (optional GELU).

    Relies on the zero-padding invariant: lanes >= d_real of x are zero, so
    sum(x)/d_real and sum(x*x)/d_real are exact moments over the real lanes.
    """
    x = x_ref[...].astype(jnp.float32)
    if apply_ln:
        inv_d = 1.0 / d_real
        mean = jnp.sum(x, axis=-1, keepdims=True) * inv_d
        var = jnp.sum(x * x, axis=-1, keepdims=True) * inv_d - mean * mean
        var = jnp.maximum(var, 0.0)
        x = (x - mean) * jax.lax.rsqrt(var + eps)
        # gamma/beta are zero-padded -> padded lanes stay exactly zero.
        x = x * g_ref[...].astype(jnp.float32) + b_ref[...].astype(jnp.float32)
    # bf16 MXU operands, f32 accumulation.
    y = jnp.dot(x.astype(jnp.bfloat16), w_ref[...].astype(jnp.bfloat16),
                preferred_element_type=jnp.float32)
    y = y + bias_ref[...].astype(jnp.float32)
    if activation == "gelu":
        # exact (erf) GELU, matching torch.nn.GELU() default
        y = 0.5 * y * (1.0 + jax.lax.erf(y * (1.0 / math.sqrt(2.0))))
    o_ref[...] = y.astype(o_ref.dtype)


def pallas_ln_linear(x, gamma, beta, w, bias, *, apply_ln, d_real,
                     activation=None, eps=1e-5):
    """y = (LN(x) if apply_ln else x) @ w + bias, optional fused GELU.

    x: (M, K), w: (K, N) with K, N multiples of 128 (or full extents).
    Tiled over (M, N) with a full-K block (LN needs the whole row).
    """
    M, K = x.shape
    N = w.shape[1]
    TM = _tile_rows(M)
    TN = _tile_lanes(N)
    kern = functools.partial(_ln_linear_kernel, apply_ln=apply_ln,
                             d_real=d_real, activation=activation, eps=eps)
    g2 = gamma.reshape(1, K).astype(jnp.float32)
    b2 = beta.reshape(1, K).astype(jnp.float32)
    bias2 = bias.reshape(1, N).astype(jnp.float32)
    flops = 2 * M * N * K + (8 * M * K if apply_ln else 0)
    return pl.pallas_call(
        kern,
        out_shape=jax.ShapeDtypeStruct((M, N), x.dtype),
        grid=(M // TM, N // TN),
        in_specs=[
            pl.BlockSpec((TM, K), lambda i, j: (i, 0)),
            pl.BlockSpec((1, K), lambda i, j: (0, 0)),
            pl.BlockSpec((1, K), lambda i, j: (0, 0)),
            pl.BlockSpec((K, TN), lambda i, j: (0, j)),
            pl.BlockSpec((1, TN), lambda i, j: (0, j)),
        ],
        out_specs=pl.BlockSpec((TM, TN), lambda i, j: (i, j)),
        compiler_params=pltpu.CompilerParams(
            dimension_semantics=("parallel", "parallel"),
            vmem_limit_bytes=VMEM_LIMIT),
        cost_estimate=pl.CostEstimate(
            flops=flops,
            transcendentals=M * N if activation == "gelu" else 0,
            bytes_accessed=4 * (M * K + K * N + M * N)),
    )(x, g2, b2, w, bias2)


def _linear_residual_kernel(x_ref, w_ref, b_ref, r_ref, o_ref, acc_ref):
    """Tiled K-accumulating matmul with fused bias + residual add."""
    @pl.when(pl.program_id(2) == 0)
    def _():
        acc_ref[...] = jnp.zeros_like(acc_ref)

    acc_ref[...] += jnp.dot(x_ref[...].astype(jnp.bfloat16),
                            w_ref[...].astype(jnp.bfloat16),
                            preferred_element_type=jnp.float32)

    @pl.when(pl.program_id(2) == pl.num_programs(2) - 1)
    def _():
        y = acc_ref[...] + b_ref[...].astype(jnp.float32) \
            + r_ref[...].astype(jnp.float32)
        o_ref[...] = y.astype(o_ref.dtype)


def pallas_linear_residual(x, w, bias, residual):
    """out = x @ w + bias + residual, grid=(M,N,K) with VMEM f32 accumulator."""
    M, K = x.shape
    N = w.shape[1]
    TM = _tile_rows(M)
    TN = _tile_lanes(N)
    TK = _tile_lanes(K)
    return pl.pallas_call(
        _linear_residual_kernel,
        out_shape=jax.ShapeDtypeStruct((M, N), x.dtype),
        grid=(M // TM, N // TN, K // TK),
        in_specs=[
            pl.BlockSpec((TM, TK), lambda i, j, k: (i, k)),
            pl.BlockSpec((TK, TN), lambda i, j, k: (k, j)),
            pl.BlockSpec((1, TN), lambda i, j, k: (0, j)),
            pl.BlockSpec((TM, TN), lambda i, j, k: (i, j)),
        ],
        out_specs=pl.BlockSpec((TM, TN), lambda i, j, k: (i, j)),
        scratch_shapes=[pltpu.VMEM((TM, TN), jnp.float32)],
        compiler_params=pltpu.CompilerParams(
            dimension_semantics=("parallel", "parallel", "arbitrary"),
            vmem_limit_bytes=VMEM_LIMIT),
        cost_estimate=pl.CostEstimate(
            flops=2 * M * N * K, transcendentals=0,
            bytes_accessed=4 * (M * K + K * N + 2 * M * N)),
    )(x, w, bias.reshape(1, N).astype(jnp.float32), residual)


def _attention_kernel(q_ref, k_ref, v_ref, o_ref, *, n_real):
    """One (batch, head) tile: refs are (n_pad, dh_pad); padded lanes are zero
    and the softmax scale is already folded into the q projection weights."""
    q = q_ref[...].astype(jnp.float32)
    k = k_ref[...].astype(jnp.float32)
    v = v_ref[...].astype(jnp.float32)
    # scores = q @ k^T  (contraction over the 128-lane padded head dim)
    s = jax.lax.dot_general(q, k, (((1,), (1,)), ((), ())),
                            preferred_element_type=jnp.float32)
    # mask padded key tokens
    key_idx = jax.lax.broadcasted_iota(jnp.int32, s.shape, 1)
    s = jnp.where(key_idx < n_real, s, -1e30)
    m = jnp.max(s, axis=-1, keepdims=True)
    e = jnp.exp(s - m)
    denom = jnp.sum(e, axis=-1, keepdims=True)
    attn = e * pl.reciprocal(denom, approx=True)
    out = jnp.dot(attn, v, preferred_element_type=jnp.float32)
    o_ref[...] = out.astype(o_ref.dtype)


def pallas_attention(qkv, *, heads, dh_pad, n_real):
    """qkv: (B, n_pad, 3*heads*dh_pad) laid out as per-(component, head)
    128-lane blocks [q_h0..q_hH, k_h0.., v_h0..].  Returns (B, n_pad,
    heads*dh_pad) with per-head 128-lane blocks (matches packed out_w rows)."""
    B, n_pad, width = qkv.shape
    kern = functools.partial(_attention_kernel, n_real=n_real)
    blk = (None, n_pad, dh_pad)
    q_spec = pl.BlockSpec(blk, lambda b, h: (b, 0, h))
    k_spec = pl.BlockSpec(blk, lambda b, h: (b, 0, heads + h))
    v_spec = pl.BlockSpec(blk, lambda b, h: (b, 0, 2 * heads + h))
    return pl.pallas_call(
        kern,
        out_shape=jax.ShapeDtypeStruct((B, n_pad, heads * dh_pad), qkv.dtype),
        grid=(B, heads),
        in_specs=[q_spec, k_spec, v_spec],
        out_specs=pl.BlockSpec(blk, lambda b, h: (b, 0, h)),
        compiler_params=pltpu.CompilerParams(
            dimension_semantics=("parallel", "parallel"),
            vmem_limit_bytes=VMEM_LIMIT),
        cost_estimate=pl.CostEstimate(
            flops=4 * B * heads * n_pad * n_pad * dh_pad,
            transcendentals=B * heads * n_pad * n_pad,
            bytes_accessed=4 * (3 * B * heads * n_pad * dh_pad
                                + B * heads * n_pad * dh_pad)),
    )(qkv, qkv, qkv)


# -----------------------------------------------------------------------------
# Parameter init (original torch-like shapes) and padded packing
# -----------------------------------------------------------------------------
def init_vit_params(key, *, image_size, patch_size, num_classes, dim, depth,
                    heads, dim_head, mlp_dim, channels):
    ih, iw = image_size, image_size
    ph, pw = patch_size, patch_size
    num_patches = (ih // ph) * (iw // pw)
    patch_dim = channels * ph * pw
    inner_dim = heads * dim_head

    keys = iter(jax.random.split(key, 8 + depth * 10))

    def nrm(shape, scale=0.02):
        return jax.random.normal(next(keys), shape, jnp.float32) * scale

    params = {
        "patch_w": nrm((patch_dim, dim)),
        "patch_b": jnp.zeros((dim,), jnp.float32),
        "pos_embedding": nrm((1, num_patches + 1, dim)),
        "cls_token": nrm((1, 1, dim)),
        "layers": [],
        "head_ln_g": jnp.ones((dim,), jnp.float32),
        "head_ln_b": jnp.zeros((dim,), jnp.float32),
        "head_w": nrm((dim, num_classes)),
        "head_b": jnp.zeros((num_classes,), jnp.float32),
    }
    for _ in range(depth):
        params["layers"].append({
            "ln1_g": jnp.ones((dim,), jnp.float32),
            "ln1_b": jnp.zeros((dim,), jnp.float32),
            "qkv_w": nrm((dim, inner_dim * 3)),   # Linear(dim, inner*3, bias=False)
            "out_w": nrm((inner_dim, dim)),
            "out_b": jnp.zeros((dim,), jnp.float32),
            "ln2_g": jnp.ones((dim,), jnp.float32),
            "ln2_b": jnp.zeros((dim,), jnp.float32),
            "ff1_w": nrm((dim, mlp_dim)),
            "ff1_b": jnp.zeros((mlp_dim,), jnp.float32),
            "ff2_w": nrm((mlp_dim, dim)),
            "ff2_b": jnp.zeros((dim,), jnp.float32),
        })
    return params


def _pack_qkv_weight(qkv_w, heads, dim_head, d_pad, dh_pad, scale):
    """(dim, 3*heads*dim_head) -> (d_pad, 3*heads*dh_pad); column blocks of
    width dh_pad ordered [q_h0..q_h{H-1}, k_h0.., v_h0..]; scale folded into q."""
    dim = qkv_w.shape[0]
    inner = heads * dim_head
    w = jnp.zeros((d_pad, 3 * heads * dh_pad), qkv_w.dtype)
    for c in range(3):
        comp = qkv_w[:, c * inner:(c + 1) * inner]
        if c == 0:
            comp = comp * scale
        for h in range(heads):
            blk = comp[:, h * dim_head:(h + 1) * dim_head]
            col = (c * heads + h) * dh_pad
            w = w.at[:dim, col:col + dim_head].set(blk)
    return w


def _pack_out_weight(out_w, heads, dim_head, dh_pad, d_pad):
    """(heads*dim_head, dim) -> (heads*dh_pad, d_pad), matching the attention
    kernel's per-head 128-lane output blocks."""
    dim = out_w.shape[1]
    w = jnp.zeros((heads * dh_pad, d_pad), out_w.dtype)
    for h in range(heads):
        blk = out_w[h * dim_head:(h + 1) * dim_head, :]
        w = w.at[h * dh_pad:h * dh_pad + dim_head, :dim].set(blk)
    return w


def prepare_params(raw, *, heads, dim_head):
    """Zero-pad all weights so every Pallas lane dim is a multiple of 128."""
    dim = raw["patch_w"].shape[1]
    patch_dim = raw["patch_w"].shape[0]
    mlp_dim = raw["layers"][0]["ff1_w"].shape[1]
    num_classes = raw["head_w"].shape[1]

    d_pad = _round_up(dim, LANE)
    patch_pad = _round_up(patch_dim, LANE)
    mlp_pad = _round_up(mlp_dim, LANE)
    cls_pad = _round_up(num_classes, LANE)
    dh_pad = _round_up(dim_head, LANE)
    scale = dim_head ** -0.5

    p = {
        "patch_w": _pad2(raw["patch_w"], patch_pad, d_pad),
        "patch_b": _pad1(raw["patch_b"], d_pad),
        "pos_embedding": jnp.pad(raw["pos_embedding"],
                                 ((0, 0), (0, 0), (0, d_pad - dim))),
        "cls_token": jnp.pad(raw["cls_token"],
                             ((0, 0), (0, 0), (0, d_pad - dim))),
        "head_ln_g": _pad1(raw["head_ln_g"], d_pad),
        "head_ln_b": _pad1(raw["head_ln_b"], d_pad),
        "head_w": _pad2(raw["head_w"], d_pad, cls_pad),
        "head_b": _pad1(raw["head_b"], cls_pad),
        "layers": [],
    }
    for lp in raw["layers"]:
        p["layers"].append({
            "ln1_g": _pad1(lp["ln1_g"], d_pad),
            "ln1_b": _pad1(lp["ln1_b"], d_pad),
            "qkv_w": _pack_qkv_weight(lp["qkv_w"], heads, dim_head,
                                      d_pad, dh_pad, scale),
            "out_w": _pack_out_weight(lp["out_w"], heads, dim_head,
                                      dh_pad, d_pad),
            "out_b": _pad1(lp["out_b"], d_pad),
            "ln2_g": _pad1(lp["ln2_g"], d_pad),
            "ln2_b": _pad1(lp["ln2_b"], d_pad),
            "ff1_w": _pad2(lp["ff1_w"], d_pad, mlp_pad),
            "ff1_b": _pad1(lp["ff1_b"], mlp_pad),
            "ff2_w": _pad2(lp["ff2_w"], mlp_pad, d_pad),
            "ff2_b": _pad1(lp["ff2_b"], d_pad),
        })
    return p


# -----------------------------------------------------------------------------
# Forward pass (layout glue in XLA, all matmuls / LN / softmax in Pallas)
# -----------------------------------------------------------------------------
def vit_forward(params, img, *, patch_size, heads, dim_head, dim, num_classes,
                pool="cls"):
    B, C, H, W = img.shape
    ph = pw = patch_size
    hp, wp = H // ph, W // pw
    n = hp * wp
    patch_dim = C * ph * pw

    d_pad = params["patch_w"].shape[1]
    patch_pad = params["patch_w"].shape[0]
    dh_pad = params["layers"][0]["qkv_w"].shape[1] // (3 * heads)

    # Rearrange 'b c (h p1) (w p2) -> b (h w) (p1 p2 c)'  (pure layout, XLA)
    x = img.reshape(B, C, hp, ph, wp, pw)
    x = jnp.transpose(x, (0, 2, 4, 3, 5, 1)).reshape(B, n, patch_dim)
    x = jnp.pad(x, ((0, 0), (0, 0), (0, patch_pad - patch_dim)))

    # Patch embedding (Pallas tiled matmul, no LN)
    ones = jnp.ones((patch_pad,), jnp.float32)
    zeros = jnp.zeros((patch_pad,), jnp.float32)
    x = pallas_ln_linear(x.reshape(B * n, patch_pad), ones, zeros,
                         params["patch_w"], params["patch_b"],
                         apply_ln=False, d_real=patch_dim)
    x = x.reshape(B, n, d_pad)

    # cls token + positional embedding (dropout is identity at p=0)
    cls = jnp.broadcast_to(params["cls_token"], (B, 1, d_pad))
    x = jnp.concatenate([cls, x], axis=1)
    x = x + params["pos_embedding"][:, :n + 1]
    n_tok = n + 1
    n_pad = _round_up(n_tok, SUBLANE)
    x = jnp.pad(x, ((0, 0), (0, n_pad - n_tok), (0, 0)))
    M = B * n_pad

    qkv_bias = jnp.zeros((3 * heads * dh_pad,), jnp.float32)

    for lp in params["layers"]:
        # --- PreNorm + Attention + residual (LN fused into qkv matmul) ---
        xf = x.reshape(M, d_pad)
        qkv = pallas_ln_linear(xf, lp["ln1_g"], lp["ln1_b"], lp["qkv_w"],
                               qkv_bias, apply_ln=True, d_real=dim)
        attn = pallas_attention(qkv.reshape(B, n_pad, 3 * heads * dh_pad),
                                heads=heads, dh_pad=dh_pad, n_real=n_tok)
        x = pallas_linear_residual(attn.reshape(M, heads * dh_pad),
                                   lp["out_w"], lp["out_b"], xf)
        x = x.reshape(B, n_pad, d_pad)

        # --- PreNorm + FeedForward + residual (LN+GELU fused, residual fused) ---
        xf = x.reshape(M, d_pad)
        h1 = pallas_ln_linear(xf, lp["ln2_g"], lp["ln2_b"], lp["ff1_w"],
                              lp["ff1_b"], apply_ln=True, d_real=dim,
                              activation="gelu")
        x = pallas_linear_residual(h1, lp["ff2_w"], lp["ff2_b"], xf)
        x = x.reshape(B, n_pad, d_pad)

    # pool over real tokens only
    if pool == "mean":
        x = jnp.sum(x[:, :n_tok], axis=1) / n_tok
    else:
        x = x[:, 0]                                          # (B, d_pad)

    # mlp_head: fused LayerNorm + Linear (Pallas), then slice to real classes
    logits = pallas_ln_linear(x, params["head_ln_g"], params["head_ln_b"],
                              params["head_w"], params["head_b"],
                              apply_ln=True, d_real=dim)
    return logits[:, :num_classes]


# -----------------------------------------------------------------------------
if __name__ == "__main__":
    # Small ViT config
    image_size = 16
    patch_size = 4
    num_classes = 10
    dim = 32
    depth = 2
    heads = 4
    dim_head = 8
    mlp_dim = 64
    channels = 3
    batch = 2

    key = jax.random.PRNGKey(0)
    pkey, xkey = jax.random.split(key)

    raw_params = init_vit_params(
        pkey, image_size=image_size, patch_size=patch_size,
        num_classes=num_classes, dim=dim, depth=depth, heads=heads,
        dim_head=dim_head, mlp_dim=mlp_dim, channels=channels)
    params = prepare_params(raw_params, heads=heads, dim_head=dim_head)

    img = jax.random.normal(xkey, (batch, channels, image_size, image_size),
                            jnp.float32)

    fwd = jax.jit(functools.partial(
        vit_forward, patch_size=patch_size, heads=heads, dim_head=dim_head,
        dim=dim, num_classes=num_classes, pool="cls"))
    logits = fwd(params, img)
    jax.block_until_ready(logits)
    assert logits.shape == (batch, num_classes)
    assert bool(jnp.all(jnp.isfinite(logits)))
    print("KERNEL_OK")
</pallas_src>

<mosaic_0001>
module attributes {stable_mosaic.version = 11 : i64} {
  func.func @_ln_linear_kernel(%arg0: i32, %arg1: i32, %arg2: memref<24x128xf32, #tpu.memory_space<vmem>>, %arg3: memref<1x128xf32, #tpu.memory_space<vmem>>, %arg4: memref<1x128xf32, #tpu.memory_space<vmem>>, %arg5: memref<128x256xf32, #tpu.memory_space<vmem>>, %arg6: memref<1x256xf32, #tpu.memory_space<vmem>>, %arg7: memref<24x256xf32, #tpu.memory_space<vmem>>) attributes {dimension_semantics = [#tpu.dimension_semantics<parallel>, #tpu.dimension_semantics<parallel>], iteration_bounds = array<i64: 2, 6>, scalar_prefetch = 0 : i64, scratch_operands = 0 : i64, tpu.core_type = #tpu.core_type<tc>, window_params = [{transform_indices = @transform_0, window_bounds = array<i64: 24, 128>}, {pipeline_mode = #tpu.pipeline_mode<synchronous>, transform_indices = @transform_1, window_bounds = array<i64: 1, 128>}, {pipeline_mode = #tpu.pipeline_mode<synchronous>, transform_indices = @transform_2, window_bounds = array<i64: 1, 128>}, {transform_indices = @transform_3, window_bounds = array<i64: 128, 256>}, {transform_indices = @transform_4, window_bounds = array<i64: 1, 256>}, {transform_indices = @transform_5, window_bounds = array<i64: 24, 256>}]} {
    %c0 = arith.constant 0 : index
    %c0_0 = arith.constant 0 : index
    %0 = vector.load %arg2[%c0, %c0_0] : memref<24x128xf32, #tpu.memory_space<vmem>>, vector<24x128xf32>
    %cst = arith.constant dense<0.000000e+00> : vector<24xf32>
    %1 = vector.multi_reduction <add>, %0, %cst [1] : vector<24x128xf32> to vector<24xf32>
    %2 = vector.shape_cast %1 : vector<24xf32> to vector<24x1xf32>
    %cst_1 = arith.constant 3.125000e-02 : f32
    %3 = vector.broadcast %cst_1 : f32 to vector<24x1xf32>
    %4 = arith.mulf %2, %3 : vector<24x1xf32>
    %5 = arith.mulf %0, %0 : vector<24x128xf32>
    %cst_2 = arith.constant dense<0.000000e+00> : vector<24xf32>
    %6 = vector.multi_reduction <add>, %5, %cst_2 [1] : vector<24x128xf32> to vector<24xf32>
    %7 = vector.shape_cast %6 : vector<24xf32> to vector<24x1xf32>
    %cst_3 = arith.constant 3.125000e-02 : f32
    %8 = vector.broadcast %cst_3 : f32 to vector<24x1xf32>
    %9 = arith.mulf %7, %8 : vector<24x1xf32>
    %10 = arith.mulf %4, %4 : vector<24x1xf32>
    %11 = arith.subf %9, %10 : vector<24x1xf32>
    %cst_4 = arith.constant 0.000000e+00 : f32
    %12 = vector.broadcast %cst_4 : f32 to vector<24x1xf32>
    %13 = arith.maximumf %11, %12 : vector<24x1xf32>
    %14 = vector.broadcast %4 : vector<24x1xf32> to vector<24x128xf32>
    %15 = arith.subf %0, %14 : vector<24x128xf32>
    %cst_5 = arith.constant 9.99999974E-6 : f32
    %16 = vector.broadcast %cst_5 : f32 to vector<24x1xf32>
    %17 = arith.addf %13, %16 : vector<24x1xf32>
    %18 = math.rsqrt %17 : vector<24x1xf32>
    %19 = vector.broadcast %18 : vector<24x1xf32> to vector<24x128xf32>
    %20 = arith.mulf %15, %19 : vector<24x128xf32>
    %c0_6 = arith.constant 0 : index
    %c0_7 = arith.constant 0 : index
    %21 = vector.load %arg3[%c0_6, %c0_7] : memref<1x128xf32, #tpu.memory_space<vmem>>, vector<1x128xf32>
    %22 = vector.broadcast %21 : vector<1x128xf32> to vector<24x128xf32>
    %23 = arith.mulf %20, %22 : vector<24x128xf32>
    %c0_8 = arith.constant 0 : index
    %c0_9 = arith.constant 0 : index
    %24 = vector.load %arg4[%c0_8, %c0_9] : memref<1x128xf32, #tpu.memory_space<vmem>>, vector<1x128xf32>
    %25 = vector.broadcast %24 : vector<1x128xf32> to vector<24x128xf32>
    %26 = arith.addf %23, %25 : vector<24x128xf32>
    %27 = arith.truncf %26 : vector<24x128xf32> to vector<24x128xbf16>
    %c0_10 = arith.constant 0 : index
    %c0_11 = arith.constant 0 : index
    %28 = vector.load %arg5[%c0_10, %c0_11] : memref<128x256xf32, #tpu.memory_space<vmem>>, vector<128x256xf32>
    %29 = arith.truncf %28 : vector<128x256xf32> to vector<128x256xbf16>
    %cst_12 = arith.constant dense<0.000000e+00> : vector<24x256xf32>
    %30 = tpu.matmul %27, %29, %cst_12 {dimension_numbers = #tpu.dot_dimension_numbers<[1], [0], [0], [1], [0, 0, 1, 1], [], []>} : vector<24x128xbf16>, vector<128x256xbf16>, vector<24x256xf32> -> vector<24x256xf32>
    %c0_13 = arith.constant 0 : index
    %c0_14 = arith.constant 0 : index
    %31 = vector.load %arg6[%c0_13, %c0_14] : memref<1x256xf32, #tpu.memory_space<vmem>>, vector<1x256xf32>
    %32 = vector.broadcast %31 : vector<1x256xf32> to vector<24x256xf32>
    %33 = arith.addf %30, %32 : vector<24x256xf32>
    %c0_15 = arith.constant 0 : index
    %c0_16 = arith.constant 0 : index
    %34 = vector.load %arg7[%c0_15, %c0_16] : memref<24x256xf32, #tpu.memory_space<vmem>>, vector<24x256xf32>
    tpu.vector_store %arg7[%c0_15, %c0_16], %33 {strides = array<i32>} : memref<24x256xf32, #tpu.memory_space<vmem>>, vector<24x256xf32>,
    return
  }
  func.func @transform_0(%arg0: i32, %arg1: i32) -> (i32, i32) {
    %c0_i32 = arith.constant 0 : i32
    %c0_i32_0 = arith.constant 0 : i32
    return %arg0, %c0_i32 : i32, i32
  }
  func.func @transform_1(%arg0: i32, %arg1: i32) -> (i32, i32) {
    %c0_i32 = arith.constant 0 : i32
    %c0_i32_0 = arith.constant 0 : i32
    %c0_i32_1 = arith.constant 0 : i32
    return %c0_i32, %c0_i32_0 : i32, i32
  }
  func.func @transform_2(%arg0: i32, %arg1: i32) -> (i32, i32) {
    %c0_i32 = arith.constant 0 : i32
    %c0_i32_0 = arith.constant 0 : i32
    %c0_i32_1 = arith.constant 0 : i32
    return %c0_i32, %c0_i32_0 : i32, i32
  }
  func.func @transform_3(%arg0: i32, %arg1: i32) -> (i32, i32) {
    %c0_i32 = arith.constant 0 : i32
    %c0_i32_0 = arith.constant 0 : i32
    return %c0_i32, %arg1 : i32, i32
  }
  func.func @transform_4(%arg0: i32, %arg1: i32) -> (i32, i32) {
    %c0_i32 = arith.constant 0 : i32
    %c0_i32_0 = arith.constant 0 : i32
    return %c0_i32, %arg1 : i32, i32
  }
  func.func @transform_5(%arg0: i32, %arg1: i32) -> (i32, i32) {
    %c0_i32 = arith.constant 0 : i32
    return %arg0, %arg1 : i32, i32
  }
}

module attributes {stable_mosaic.version = 11 : i64} {
  func.func @_ln_linear_kernel(%arg0: i32, %arg1: i32, %arg2: memref<16x128xf32, #tpu.memory_space<vmem>>, %arg3: memref<1x128xf32, #tpu.memory_space<vmem>>, %arg4: memref<1x128xf32, #tpu.memory_space<vmem>>, %arg5: memref<128x128xf32, #tpu.memory_space<vmem>>, %arg6: memref<1x128xf32, #tpu.memory_space<vmem>>, %arg7: memref<16x128xf32, #tpu.memory_space<vmem>>) attributes {dimension_semantics = [#tpu.dimension_semantics<parallel>, #tpu.dimension_semantics<parallel>], iteration_bounds = array<i64: 2, 1>, scalar_prefetch = 0 : i64, scratch_operands = 0 : i64, tpu.core_type = #tpu.core_type<tc>, window_params = [{transform_indices = @transform_0, window_bounds = array<i64: 16, 128>}, {pipeline_mode = #tpu.pipeline_mode<synchronous>, transform_indices = @transform_1, window_bounds = array<i64: 1, 128>}, {pipeline_mode = #tpu.pipeline_mode<synchronous>, transform_indices = @transform_2, window_bounds = array<i64: 1, 128>}, {transform_indices = @transform_3, window_bounds = array<i64: 128, 128>}, {transform_indices = @transform_4, window_bounds = array<i64: 1, 128>}, {transform_indices = @transform_5, window_bounds = array<i64: 16, 128>}]} {
    %c0 = arith.constant 0 : index
    %c0_0 = arith.constant 0 : index
    %0 = vector.load %arg2[%c0, %c0_0] : memref<16x128xf32, #tpu.memory_space<vmem>>, vector<16x128xf32>
    %1 = arith.truncf %0 : vector<16x128xf32> to vector<16x128xbf16>
    %c0_1 = arith.constant 0 : index
    %c0_2 = arith.constant 0 : index
    %2 = vector.load %arg5[%c0_1, %c0_2] : memref<128x128xf32, #tpu.memory_space<vmem>>, vector<128x128xf32>
    %3 = arith.truncf %2 : vector<128x128xf32> to vector<128x128xbf16>
    %cst = arith.constant dense<0.000000e+00> : vector<16x128xf32>
    %4 = tpu.matmul %1, %3, %cst {dimension_numbers = #tpu.dot_dimension_numbers<[1], [0], [0], [1], [0, 0, 1, 1], [], []>} : vector<16x128xbf16>, vector<128x128xbf16>, vector<16x128xf32> -> vector<16x128xf32>
    %c0_3 = arith.constant 0 : index
    %c0_4 = arith.constant 0 : index
    %5 = vector.load %arg6[%c0_3, %c0_4] : memref<1x128xf32, #tpu.memory_space<vmem>>, vector<1x128xf32>
    %6 = vector.broadcast %5 : vector<1x128xf32> to vector<16x128xf32>
    %7 = arith.addf %4, %6 : vector<16x128xf32>
    %c0_5 = arith.constant 0 : index
    %c0_6 = arith.constant 0 : index
    %8 = vector.load %arg7[%c0_5, %c0_6] : memref<16x128xf32, #tpu.memory_space<vmem>>, vector<16x128xf32>
    tpu.vector_store %arg7[%c0_5, %c0_6], %7 {strides = array<i32>} : memref<16x128xf32, #tpu.memory_space<vmem>>, vector<16x128xf32>,
    return
  }
  func.func @transform_0(%arg0: i32, %arg1: i32) -> (i32, i32) {
    %c0_i32 = arith.constant 0 : i32
    %c0_i32_0 = arith.constant 0 : i32
    return %arg0, %c0_i32 : i32, i32
  }
  func.func @transform_1(%arg0: i32, %arg1: i32) -> (i32, i32) {
    %c0_i32 = arith.constant 0 : i32
    %c0_i32_0 = arith.constant 0 : i32
    %c0_i32_1 = arith.constant 0 : i32
    return %c0_i32, %c0_i32_0 : i32, i32
  }
  func.func @transform_2(%arg0: i32, %arg1: i32) -> (i32, i32) {
    %c0_i32 = arith.constant 0 : i32
    %c0_i32_0 = arith.constant 0 : i32
    %c0_i32_1 = arith.constant 0 : i32
    return %c0_i32, %c0_i32_0 : i32, i32
  }
  func.func @transform_3(%arg0: i32, %arg1: i32) -> (i32, i32) {
    %c0_i32 = arith.constant 0 : i32
    %c0_i32_0 = arith.constant 0 : i32
    return %c0_i32, %arg1 : i32, i32
  }
  func.func @transform_4(%arg0: i32, %arg1: i32) -> (i32, i32) {
    %c0_i32 = arith.constant 0 : i32
    %c0_i32_0 = arith.constant 0 : i32
    return %c0_i32, %arg1 : i32, i32
  }
  func.func @transform_5(%arg0: i32, %arg1: i32) -> (i32, i32) {
    %c0_i32 = arith.constant 0 : i32
    return %arg0, %arg1 : i32, i32
  }
}

module attributes {stable_mosaic.version = 11 : i64} {
  func.func @_attention_kernel(%arg0: i32, %arg1: i32, %arg2: memref<1x24x128xf32, #tpu.memory_space<vmem>>, %arg3: memref<1x24x128xf32, #tpu.memory_space<vmem>>, %arg4: memref<1x24x128xf32, #tpu.memory_space<vmem>>, %arg5: memref<1x24x128xf32, #tpu.memory_space<vmem>>) attributes {dimension_semantics = [#tpu.dimension_semantics<parallel>, #tpu.dimension_semantics<parallel>], iteration_bounds = array<i64: 2, 4>, scalar_prefetch = 0 : i64, scratch_operands = 0 : i64, tpu.core_type = #tpu.core_type<tc>, window_params = [{transform_indices = @transform_0, window_bounds = array<i64: 1, 24, 128>}, {transform_indices = @transform_1, window_bounds = array<i64: 1, 24, 128>}, {transform_indices = @transform_2, window_bounds = array<i64: 1, 24, 128>}, {transform_indices = @transform_3, window_bounds = array<i64: 1, 24, 128>}]} {
    %c0 = arith.constant 0 : index
    %c0_0 = arith.constant 0 : index
    %c0_1 = arith.constant 0 : index
    %0 = vector.load %arg2[%c0, %c0_0, %c0_1] : memref<1x24x128xf32, #tpu.memory_space<vmem>>, vector<1x24x128xf32>
    %1 = vector.shape_cast %0 : vector<1x24x128xf32> to vector<24x128xf32>
    %c0_2 = arith.constant 0 : index
    %c0_3 = arith.constant 0 : index
    %c0_4 = arith.constant 0 : index
    %2 = vector.load %arg3[%c0_2, %c0_3, %c0_4] : memref<1x24x128xf32, #tpu.memory_space<vmem>>, vector<1x24x128xf32>
    %3 = vector.shape_cast %2 : vector<1x24x128xf32> to vector<24x128xf32>
    %c0_5 = arith.constant 0 : index
    %c0_6 = arith.constant 0 : index
    %c0_7 = arith.constant 0 : index
    %4 = vector.load %arg4[%c0_5, %c0_6, %c0_7] : memref<1x24x128xf32, #tpu.memory_space<vmem>>, vector<1x24x128xf32>
    %5 = vector.shape_cast %4 : vector<1x24x128xf32> to vector<24x128xf32>
    %cst = arith.constant dense<0.000000e+00> : vector<24x24xf32>
    %6 = tpu.matmul %1, %3, %cst {dimension_numbers = #tpu.dot_dimension_numbers<[1], [1], [0], [0], [0, 0, 1, 0], [], []>} : vector<24x128xf32>, vector<24x128xf32>, vector<24x24xf32> -> vector<24x24xf32>
    %7 = tpu.iota {dimensions = array<i32: 1>} : vector<24x24xi32>
    %c17_i32 = arith.constant 17 : i32
    %8 = vector.broadcast %c17_i32 : i32 to vector<24x24xi32>
    %9 = arith.cmpi slt, %7, %8 : vector<24x24xi32>
    %cst_8 = arith.constant -1.000000e+30 : f32
    %10 = vector.broadcast %cst_8 : f32 to vector<24x24xf32>
    %11 = arith.select %9, %6, %10 : vector<24x24xi1>, vector<24x24xf32>
    %cst_9 = arith.constant dense<0xFF800000> : vector<24xf32>
    %12 = vector.multi_reduction <maximumf>, %11, %cst_9 [1] : vector<24x24xf32> to vector<24xf32>
    %13 = vector.shape_cast %12 : vector<24xf32> to vector<24x1xf32>
    %14 = vector.broadcast %13 : vector<24x1xf32> to vector<24x24xf32>
    %15 = arith.subf %11, %14 : vector<24x24xf32>
    %16 = math.exp %15 : vector<24x24xf32>
    %cst_10 = arith.constant dense<0.000000e+00> : vector<24xf32>
    %17 = vector.multi_reduction <add>, %16, %cst_10 [1] : vector<24x24xf32> to vector<24xf32>
    %18 = vector.shape_cast %17 : vector<24xf32> to vector<24x1xf32>
    %19 = tpu.reciprocal %18 {approx = true} : vector<24x1xf32> -> vector<24x1xf32>
    %20 = vector.broadcast %19 : vector<24x1xf32> to vector<24x24xf32>
    %21 = arith.mulf %16, %20 : vector<24x24xf32>
    %cst_11 = arith.constant dense<0.000000e+00> : vector<24x128xf32>
    %22 = tpu.matmul %21, %5, %cst_11 {dimension_numbers = #tpu.dot_dimension_numbers<[1], [0], [0], [1], [0, 0, 1, 1], [], []>} : vector<24x24xf32>, vector<24x128xf32>, vector<24x128xf32> -> vector<24x128xf32>
    %c0_12 = arith.constant 0 : index
    %c0_13 = arith.constant 0 : index
    %c0_14 = arith.constant 0 : index
    %23 = vector.load %arg5[%c0_12, %c0_13, %c0_14] : memref<1x24x128xf32, #tpu.memory_space<vmem>>, vector<1x24x128xf32>
    %24 = vector.shape_cast %23 : vector<1x24x128xf32> to vector<24x128xf32>
    %25 = vector.shape_cast %22 : vector<24x128xf32> to vector<1x24x128xf32>
    tpu.vector_store %arg5[%c0_12, %c0_13, %c0_14], %25 {strides = array<i32>} : memref<1x24x128xf32, #tpu.memory_space<vmem>>, vector<1x24x128xf32>,
    return
  }
  func.func @transform_0(%arg0: i32, %arg1: i32) -> (i32, i32, i32) {
    %c0_i32 = arith.constant 0 : i32
    %c0_i32_0 = arith.constant 0 : i32
    return %arg0, %c0_i32, %arg1 : i32, i32, i32
  }
  func.func @transform_1(%arg0: i32, %arg1: i32) -> (i32, i32, i32) {
    %c4_i32 = arith.constant 4 : i32
    %0 = arith.addi %c4_i32, %arg1 : i32
    %c0_i32 = arith.constant 0 : i32
    %c0_i32_0 = arith.constant 0 : i32
    return %arg0, %c0_i32, %0 : i32, i32, i32
  }
  func.func @transform_2(%arg0: i32, %arg1: i32) -> (i32, i32, i32) {
    %c8_i32 = arith.constant 8 : i32
    %0 = arith.addi %c8_i32, %arg1 : i32
    %c0_i32 = arith.constant 0 : i32
    %c0_i32_0 = arith.constant 0 : i32
    return %arg0, %c0_i32, %0 : i32, i32, i32
  }
  func.func @transform_3(%arg0: i32, %arg1: i32) -> (i32, i32, i32) {
    %c0_i32 = arith.constant 0 : i32
    %c0_i32_0 = arith.constant 0 : i32
    return %arg0, %c0_i32, %arg1 : i32, i32, i32
  }
}

module attributes {stable_mosaic.version = 11 : i64} {
  func.func @_linear_residual_kernel(%arg0: i32, %arg1: i32, %arg2: i32, %arg3: memref<24x256xf32, #tpu.memory_space<vmem>>, %arg4: memref<256x128xf32, #tpu.memory_space<vmem>>, %arg5: memref<1x128xf32, #tpu.memory_space<vmem>>, %arg6: memref<24x128xf32, #tpu.memory_space<vmem>>, %arg7: memref<24x128xf32, #tpu.memory_space<vmem>>, %arg8: memref<24x128xf32, #tpu.memory_space<vmem>>) attributes {dimension_semantics = [#tpu.dimension_semantics<parallel>, #tpu.dimension_semantics<parallel>, #tpu.dimension_semantics<arbitrary>], iteration_bounds = array<i64: 2, 1, 2>, scalar_prefetch = 0 : i64, scratch_operands = 1 : i64, tpu.core_type = #tpu.core_type<tc>, window_params = [{transform_indices = @transform_0, window_bounds = array<i64: 24, 256>}, {transform_indices = @transform_1, window_bounds = array<i64: 256, 128>}, {transform_indices = @transform_2, window_bounds = array<i64: 1, 128>}, {transform_indices = @transform_3, window_bounds = array<i64: 24, 128>}, {transform_indices = @transform_4, window_bounds = array<i64: 24, 128>}]} {
    %c0_i32 = arith.constant 0 : i32
    %0 = arith.cmpi eq, %arg2, %c0_i32 : i32
    %1 = arith.extui %0 : i1 to i32
    %c0_i32_0 = arith.constant 0 : i32
    %2 = arith.cmpi ne, %1, %c0_i32_0 : i32
    scf.if %2 {
      %cst_9 = arith.constant 0.000000e+00 : f32
      %14 = vector.broadcast %cst_9 : f32 to vector<24x128xf32>
      %c0_10 = arith.constant 0 : index
      %c0_11 = arith.constant 0 : index
      %15 = vector.load %arg8[%c0_10, %c0_11] : memref<24x128xf32, #tpu.memory_space<vmem>>, vector<24x128xf32>
      tpu.vector_store %arg8[%c0_10, %c0_11], %14 {strides = array<i32>} : memref<24x128xf32, #tpu.memory_space<vmem>>, vector<24x128xf32>,
    } else {
    }
    %c0 = arith.constant 0 : index
    %c0_1 = arith.constant 0 : index
    %3 = vector.load %arg8[%c0, %c0_1] : memref<24x128xf32, #tpu.memory_space<vmem>>, vector<24x128xf32>
    %c0_2 = arith.constant 0 : index
    %c0_3 = arith.constant 0 : index
    %4 = vector.load %arg3[%c0_2, %c0_3] : memref<24x256xf32, #tpu.memory_space<vmem>>, vector<24x256xf32>
    %5 = arith.truncf %4 : vector<24x256xf32> to vector<24x256xbf16>
    %c0_4 = arith.constant 0 : index
    %c0_5 = arith.constant 0 : index
    %6 = vector.load %arg4[%c0_4, %c0_5] : memref<256x128xf32, #tpu.memory_space<vmem>>, vector<256x128xf32>
    %7 = arith.truncf %6 : vector<256x128xf32> to vector<256x128xbf16>
    %cst = arith.constant dense<0.000000e+00> : vector<24x128xf32>
    %8 = tpu.matmul %5, %7, %cst {dimension_numbers = #tpu.dot_dimension_numbers<[1], [0], [0], [1], [0, 0, 1, 1], [], []>} : vector<24x256xbf16>, vector<256x128xbf16>, vector<24x128xf32> -> vector<24x128xf32>
    %9 = arith.addf %3, %8 : vector<24x128xf32>
    %c0_6 = arith.constant 0 : index
    %c0_7 = arith.constant 0 : index
    %10 = vector.load %arg8[%c0_6, %c0_7] : memref<24x128xf32, #tpu.memory_space<vmem>>, vector<24x128xf32>
    tpu.vector_store %arg8[%c0_6, %c0_7], %9 {strides = array<i32>} : memref<24x128xf32, #tpu.memory_space<vmem>>, vector<24x128xf32>,
    %c1_i32 = arith.constant 1 : i32
    %11 = arith.cmpi eq, %arg2, %c1_i32 : i32
    %12 = arith.extui %11 : i1 to i32
    %c0_i32_8 = arith.constant 0 : i32
    %13 = arith.cmpi ne, %12, %c0_i32_8 : i32
    scf.if %13 {
      %c0_9 = arith.constant 0 : index
      %c0_10 = arith.constant 0 : index
      %14 = vector.load %arg8[%c0_9, %c0_10] : memref<24x128xf32, #tpu.memory_space<vmem>>, vector<24x128xf32>
      %c0_11 = arith.constant 0 : index
      %c0_12 = arith.constant 0 : index
      %15 = vector.load %arg5[%c0_11, %c0_12] : memref<1x128xf32, #tpu.memory_space<vmem>>, vector<1x128xf32>
      %16 = vector.broadcast %15 : vector<1x128xf32> to vector<24x128xf32>
      %17 = arith.addf %14, %16 : vector<24x128xf32>
      %c0_13 = arith.constant 0 : index
      %c0_14 = arith.constant 0 : index
      %18 = vector.load %arg6[%c0_13, %c0_14] : memref<24x128xf32, #tpu.memory_space<vmem>>, vector<24x128xf32>
      %19 = arith.addf %17, %18 : vector<24x128xf32>
      %c0_15 = arith.constant 0 : index
      %c0_16 = arith.constant 0 : index
      %20 = vector.load %arg7[%c0_15, %c0_16] : memref<24x128xf32, #tpu.memory_space<vmem>>, vector<24x128xf32>
      tpu.vector_store %arg7[%c0_15, %c0_16], %19 {strides = array<i32>} : memref<24x128xf32, #tpu.memory_space<vmem>>, vector<24x128xf32>,
    } else {
    }
    return
  }
  func.func @transform_0(%arg0: i32, %arg1: i32, %arg2: i32) -> (i32, i32) {
    %c0_i32 = arith.constant 0 : i32
    return %arg0, %arg2 : i32, i32
  }
  func.func @transform_1(%arg0: i32, %arg1: i32, %arg2: i32) -> (i32, i32) {
    %c0_i32 = arith.constant 0 : i32
    return %arg2, %arg1 : i32, i32
  }
  func.func @transform_2(%arg0: i32, %arg1: i32, %arg2: i32) -> (i32, i32) {
    %c0_i32 = arith.constant 0 : i32
    %c0_i32_0 = arith.constant 0 : i32
    return %c0_i32, %arg1 : i32, i32
  }
  func.func @transform_3(%arg0: i32, %arg1: i32, %arg2: i32) -> (i32, i32) {
    %c0_i32 = arith.constant 0 : i32
    return %arg0, %arg1 : i32, i32
  }
  func.func @transform_4(%arg0: i32, %arg1: i32, %arg2: i32) -> (i32, i32) {
    %c0_i32 = arith.constant 0 : i32
    return %arg0, %arg1 : i32, i32
  }
}

module attributes {stable_mosaic.version = 11 : i64} {
  func.func @_ln_linear_kernel(%arg0: i32, %arg1: i32, %arg2: memref<24x128xf32, #tpu.memory_space<vmem>>, %arg3: memref<1x128xf32, #tpu.memory_space<vmem>>, %arg4: memref<1x128xf32, #tpu.memory_space<vmem>>, %arg5: memref<128x128xf32, #tpu.memory_space<vmem>>, %arg6: memref<1x128xf32, #tpu.memory_space<vmem>>, %arg7: memref<24x128xf32, #tpu.memory_space<vmem>>) attributes {dimension_semantics = [#tpu.dimension_semantics<parallel>, #tpu.dimension_semantics<parallel>], iteration_bounds = array<i64: 2, 1>, scalar_prefetch = 0 : i64, scratch_operands = 0 : i64, tpu.core_type = #tpu.core_type<tc>, window_params = [{transform_indices = @transform_0, window_bounds = array<i64: 24, 128>}, {pipeline_mode = #tpu.pipeline_mode<synchronous>, transform_indices = @transform_1, window_bounds = array<i64: 1, 128>}, {pipeline_mode = #tpu.pipeline_mode<synchronous>, transform_indices = @transform_2, window_bounds = array<i64: 1, 128>}, {transform_indices = @transform_3, window_bounds = array<i64: 128, 128>}, {transform_indices = @transform_4, window_bounds = array<i64: 1, 128>}, {transform_indices = @transform_5, window_bounds = array<i64: 24, 128>}]} {
    %c0 = arith.constant 0 : index
    %c0_0 = arith.constant 0 : index
    %0 = vector.load %arg2[%c0, %c0_0] : memref<24x128xf32, #tpu.memory_space<vmem>>, vector<24x128xf32>
    %cst = arith.constant dense<0.000000e+00> : vector<24xf32>
    %1 = vector.multi_reduction <add>, %0, %cst [1] : vector<24x128xf32> to vector<24xf32>
    %2 = vector.shape_cast %1 : vector<24xf32> to vector<24x1xf32>
    %cst_1 = arith.constant 3.125000e-02 : f32
    %3 = vector.broadcast %cst_1 : f32 to vector<24x1xf32>
    %4 = arith.mulf %2, %3 : vector<24x1xf32>
    %5 = arith.mulf %0, %0 : vector<24x128xf32>
    %cst_2 = arith.constant dense<0.000000e+00> : vector<24xf32>
    %6 = vector.multi_reduction <add>, %5, %cst_2 [1] : vector<24x128xf32> to vector<24xf32>
    %7 = vector.shape_cast %6 : vector<24xf32> to vector<24x1xf32>
    %cst_3 = arith.constant 3.125000e-02 : f32
    %8 = vector.broadcast %cst_3 : f32 to vector<24x1xf32>
    %9 = arith.mulf %7, %8 : vector<24x1xf32>
    %10 = arith.mulf %4, %4 : vector<24x1xf32>
    %11 = arith.subf %9, %10 : vector<24x1xf32>
    %cst_4 = arith.constant 0.000000e+00 : f32
    %12 = vector.broadcast %cst_4 : f32 to vector<24x1xf32>
    %13 = arith.maximumf %11, %12 : vector<24x1xf32>
    %14 = vector.broadcast %4 : vector<24x1xf32> to vector<24x128xf32>
    %15 = arith.subf %0, %14 : vector<24x128xf32>
    %cst_5 = arith.constant 9.99999974E-6 : f32
    %16 = vector.broadcast %cst_5 : f32 to vector<24x1xf32>
    %17 = arith.addf %13, %16 : vector<24x1xf32>
    %18 = math.rsqrt %17 : vector<24x1xf32>
    %19 = vector.broadcast %18 : vector<24x1xf32> to vector<24x128xf32>
    %20 = arith.mulf %15, %19 : vector<24x128xf32>
    %c0_6 = arith.constant 0 : index
    %c0_7 = arith.constant 0 : index
    %21 = vector.load %arg3[%c0_6, %c0_7] : memref<1x128xf32, #tpu.memory_space<vmem>>, vector<1x128xf32>
    %22 = vector.broadcast %21 : vector<1x128xf32> to vector<24x128xf32>
    %23 = arith.mulf %20, %22 : vector<24x128xf32>
    %c0_8 = arith.constant 0 : index
    %c0_9 = arith.constant 0 : index
    %24 = vector.load %arg4[%c0_8, %c0_9] : memref<1x128xf32, #tpu.memory_space<vmem>>, vector<1x128xf32>
    %25 = vector.broadcast %24 : vector<1x128xf32> to vector<24x128xf32>
    %26 = arith.addf %23, %25 : vector<24x128xf32>
    %27 = arith.truncf %26 : vector<24x128xf32> to vector<24x128xbf16>
    %c0_10 = arith.constant 0 : index
    %c0_11 = arith.constant 0 : index
    %28 = vector.load %arg5[%c0_10, %c0_11] : memref<128x128xf32, #tpu.memory_space<vmem>>, vector<128x128xf32>
    %29 = arith.truncf %28 : vector<128x128xf32> to vector<128x128xbf16>
    %cst_12 = arith.constant dense<0.000000e+00> : vector<24x128xf32>
    %30 = tpu.matmul %27, %29, %cst_12 {dimension_numbers = #tpu.dot_dimension_numbers<[1], [0], [0], [1], [0, 0, 1, 1], [], []>} : vector<24x128xbf16>, vector<128x128xbf16>, vector<24x128xf32> -> vector<24x128xf32>
    %c0_13 = arith.constant 0 : index
    %c0_14 = arith.constant 0 : index
    %31 = vector.load %arg6[%c0_13, %c0_14] : memref<1x128xf32, #tpu.memory_space<vmem>>, vector<1x128xf32>
    %32 = vector.broadcast %31 : vector<1x128xf32> to vector<24x128xf32>
    %33 = arith.addf %30, %32 : vector<24x128xf32>
    %cst_15 = arith.constant 5.000000e-01 : f32
    %34 = vector.broadcast %cst_15 : f32 to vector<24x128xf32>
    %35 = arith.mulf %34, %33 : vector<24x128xf32>
    %cst_16 = arith.constant 0.707106769 : f32
    %36 = vector.broadcast %cst_16 : f32 to vector<24x128xf32>
    %37 = arith.mulf %33, %36 : vector<24x128xf32>
    %38 = math.erf %37 : vector<24x128xf32>
    %cst_17 = arith.constant 1.000000e+00 : f32
    %39 = vector.broadcast %cst_17 : f32 to vector<24x128xf32>
    %40 = arith.addf %39, %38 : vector<24x128xf32>
    %41 = arith.mulf %35, %40 : vector<24x128xf32>
    %c0_18 = arith.constant 0 : index
    %c0_19 = arith.constant 0 : index
    %42 = vector.load %arg7[%c0_18, %c0_19] : memref<24x128xf32, #tpu.memory_space<vmem>>, vector<24x128xf32>
    tpu.vector_store %arg7[%c0_18, %c0_19], %41 {strides = array<i32>} : memref<24x128xf32, #tpu.memory_space<vmem>>, vector<24x128xf32>,
    return
  }
  func.func @transform_0(%arg0: i32, %arg1: i32) -> (i32, i32) {
    %c0_i32 = arith.constant 0 : i32
    %c0_i32_0 = arith.constant 0 : i32
    return %arg0, %c0_i32 : i32, i32
  }
  func.func @transform_1(%arg0: i32, %arg1: i32) -> (i32, i32) {
    %c0_i32 = arith.constant 0 : i32
    %c0_i32_0 = arith.constant 0 : i32
    %c0_i32_1 = arith.constant 0 : i32
    return %c0_i32, %c0_i32_0 : i32, i32
  }
  func.func @transform_2(%arg0: i32, %arg1: i32) -> (i32, i32) {
    %c0_i32 = arith.constant 0 : i32
    %c0_i32_0 = arith.constant 0 : i32
    %c0_i32_1 = arith.constant 0 : i32
    return %c0_i32, %c0_i32_0 : i32, i32
  }
  func.func @transform_3(%arg0: i32, %arg1: i32) -> (i32, i32) {
    %c0_i32 = arith.constant 0 : i32
    %c0_i32_0 = arith.constant 0 : i32
    return %c0_i32, %arg1 : i32, i32
  }
  func.func @transform_4(%arg0: i32, %arg1: i32) -> (i32, i32) {
    %c0_i32 = arith.constant 0 : i32
    %c0_i32_0 = arith.constant 0 : i32
    return %c0_i32, %arg1 : i32, i32
  }
  func.func @transform_5(%arg0: i32, %arg1: i32) -> (i32, i32) {
    %c0_i32 = arith.constant 0 : i32
    return %arg0, %arg1 : i32, i32
  }
}

module attributes {stable_mosaic.version = 11 : i64} {
  func.func @_linear_residual_kernel(%arg0: i32, %arg1: i32, %arg2: i32, %arg3: memref<24x128xf32, #tpu.memory_space<vmem>>, %arg4: memref<128x128xf32, #tpu.memory_space<vmem>>, %arg5: memref<1x128xf32, #tpu.memory_space<vmem>>, %arg6: memref<24x128xf32, #tpu.memory_space<vmem>>, %arg7: memref<24x128xf32, #tpu.memory_space<vmem>>, %arg8: memref<24x128xf32, #tpu.memory_space<vmem>>) attributes {dimension_semantics = [#tpu.dimension_semantics<parallel>, #tpu.dimension_semantics<parallel>, #tpu.dimension_semantics<arbitrary>], iteration_bounds = array<i64: 2, 1, 1>, scalar_prefetch = 0 : i64, scratch_operands = 1 : i64, tpu.core_type = #tpu.core_type<tc>, window_params = [{transform_indices = @transform_0, window_bounds = array<i64: 24, 128>}, {transform_indices = @transform_1, window_bounds = array<i64: 128, 128>}, {transform_indices = @transform_2, window_bounds = array<i64: 1, 128>}, {transform_indices = @transform_3, window_bounds = array<i64: 24, 128>}, {transform_indices = @transform_4, window_bounds = array<i64: 24, 128>}]} {
    %c0_i32 = arith.constant 0 : i32
    %0 = arith.cmpi eq, %arg2, %c0_i32 : i32
    %1 = arith.extui %0 : i1 to i32
    %c0_i32_0 = arith.constant 0 : i32
    %2 = arith.cmpi ne, %1, %c0_i32_0 : i32
    scf.if %2 {
      %cst_10 = arith.constant 0.000000e+00 : f32
      %14 = vector.broadcast %cst_10 : f32 to vector<24x128xf32>
      %c0_11 = arith.constant 0 : index
      %c0_12 = arith.constant 0 : index
      %15 = vector.load %arg8[%c0_11, %c0_12] : memref<24x128xf32, #tpu.memory_space<vmem>>, vector<24x128xf32>
      tpu.vector_store %arg8[%c0_11, %c0_12], %14 {strides = array<i32>} : memref<24x128xf32, #tpu.memory_space<vmem>>, vector<24x128xf32>,
    } else {
    }
    %c0 = arith.constant 0 : index
    %c0_1 = arith.constant 0 : index
    %3 = vector.load %arg8[%c0, %c0_1] : memref<24x128xf32, #tpu.memory_space<vmem>>, vector<24x128xf32>
    %c0_2 = arith.constant 0 : index
    %c0_3 = arith.constant 0 : index
    %4 = vector.load %arg3[%c0_2, %c0_3] : memref<24x128xf32, #tpu.memory_space<vmem>>, vector<24x128xf32>
    %5 = arith.truncf %4 : vector<24x128xf32> to vector<24x128xbf16>
    %c0_4 = arith.constant 0 : index
    %c0_5 = arith.constant 0 : index
    %6 = vector.load %arg4[%c0_4, %c0_5] : memref<128x128xf32, #tpu.memory_space<vmem>>, vector<128x128xf32>
    %7 = arith.truncf %6 : vector<128x128xf32> to vector<128x128xbf16>
    %cst = arith.constant dense<0.000000e+00> : vector<24x128xf32>
    %8 = tpu.matmul %5, %7, %cst {dimension_numbers = #tpu.dot_dimension_numbers<[1], [0], [0], [1], [0, 0, 1, 1], [], []>} : vector<24x128xbf16>, vector<128x128xbf16>, vector<24x128xf32> -> vector<24x128xf32>
    %9 = arith.addf %3, %8 : vector<24x128xf32>
    %c0_6 = arith.constant 0 : index
    %c0_7 = arith.constant 0 : index
    %10 = vector.load %arg8[%c0_6, %c0_7] : memref<24x128xf32, #tpu.memory_space<vmem>>, vector<24x128xf32>
    tpu.vector_store %arg8[%c0_6, %c0_7], %9 {strides = array<i32>} : memref<24x128xf32, #tpu.memory_space<vmem>>, vector<24x128xf32>,
    %c0_i32_8 = arith.constant 0 : i32
    %11 = arith.cmpi eq, %arg2, %c0_i32_8 : i32
    %12 = arith.extui %11 : i1 to i32
    %c0_i32_9 = arith.constant 0 : i32
    %13 = arith.cmpi ne, %12, %c0_i32_9 : i32
    scf.if %13 {
      %c0_10 = arith.constant 0 : index
      %c0_11 = arith.constant 0 : index
      %14 = vector.load %arg8[%c0_10, %c0_11] : memref<24x128xf32, #tpu.memory_space<vmem>>, vector<24x128xf32>
      %c0_12 = arith.constant 0 : index
      %c0_13 = arith.constant 0 : index
      %15 = vector.load %arg5[%c0_12, %c0_13] : memref<1x128xf32, #tpu.memory_space<vmem>>, vector<1x128xf32>
      %16 = vector.broadcast %15 : vector<1x128xf32> to vector<24x128xf32>
      %17 = arith.addf %14, %16 : vector<24x128xf32>
      %c0_14 = arith.constant 0 : index
      %c0_15 = arith.constant 0 : index
      %18 = vector.load %arg6[%c0_14, %c0_15] : memref<24x128xf32, #tpu.memory_space<vmem>>, vector<24x128xf32>
      %19 = arith.addf %17, %18 : vector<24x128xf32>
      %c0_16 = arith.constant 0 : index
      %c0_17 = arith.constant 0 : index
      %20 = vector.load %arg7[%c0_16, %c0_17] : memref<24x128xf32, #tpu.memory_space<vmem>>, vector<24x128xf32>
      tpu.vector_store %arg7[%c0_16, %c0_17], %19 {strides = array<i32>} : memref<24x128xf32, #tpu.memory_space<vmem>>, vector<24x128xf32>,
    } else {
    }
    return
  }
  func.func @transform_0(%arg0: i32, %arg1: i32, %arg2: i32) -> (i32, i32) {
    %c0_i32 = arith.constant 0 : i32
    return %arg0, %arg2 : i32, i32
  }
  func.func @transform_1(%arg0: i32, %arg1: i32, %arg2: i32) -> (i32, i32) {
    %c0_i32 = arith.constant 0 : i32
    return %arg2, %arg1 : i32, i32
  }
  func.func @transform_2(%arg0: i32, %arg1: i32, %arg2: i32) -> (i32, i32) {
    %c0_i32 = arith.constant 0 : i32
    %c0_i32_0 = arith.constant 0 : i32
    return %c0_i32, %arg1 : i32, i32
  }
  func.func @transform_3(%arg0: i32, %arg1: i32, %arg2: i32) -> (i32, i32) {
    %c0_i32 = arith.constant 0 : i32
    return %arg0, %arg1 : i32, i32
  }
  func.func @transform_4(%arg0: i32, %arg1: i32, %arg2: i32) -> (i32, i32) {
    %c0_i32 = arith.constant 0 : i32
    return %arg0, %arg1 : i32, i32
  }
}

module attributes {stable_mosaic.version = 11 : i64} {
  func.func @_ln_linear_kernel(%arg0: i32, %arg1: i32, %arg2: memref<2x128xf32, #tpu.memory_space<vmem>>, %arg3: memref<1x128xf32, #tpu.memory_space<vmem>>, %arg4: memref<1x128xf32, #tpu.memory_space<vmem>>, %arg5: memref<128x128xf32, #tpu.memory_space<vmem>>, %arg6: memref<1x128xf32, #tpu.memory_space<vmem>>, %arg7: memref<2x128xf32, #tpu.memory_space<vmem>>) attributes {dimension_semantics = [#tpu.dimension_semantics<parallel>, #tpu.dimension_semantics<parallel>], iteration_bounds = array<i64: 1, 1>, scalar_prefetch = 0 : i64, scratch_operands = 0 : i64, tpu.core_type = #tpu.core_type<tc>, window_params = [{transform_indices = @transform_0, window_bounds = array<i64: 2, 128>}, {pipeline_mode = #tpu.pipeline_mode<synchronous>, transform_indices = @transform_1, window_bounds = array<i64: 1, 128>}, {pipeline_mode = #tpu.pipeline_mode<synchronous>, transform_indices = @transform_2, window_bounds = array<i64: 1, 128>}, {transform_indices = @transform_3, window_bounds = array<i64: 128, 128>}, {transform_indices = @transform_4, window_bounds = array<i64: 1, 128>}, {transform_indices = @transform_5, window_bounds = array<i64: 2, 128>}]} {
    %c0 = arith.constant 0 : index
    %c0_0 = arith.constant 0 : index
    %0 = vector.load %arg2[%c0, %c0_0] : memref<2x128xf32, #tpu.memory_space<vmem>>, vector<2x128xf32>
    %cst = arith.constant dense<0.000000e+00> : vector<2xf32>
    %1 = vector.multi_reduction <add>, %0, %cst [1] : vector<2x128xf32> to vector<2xf32>
    %2 = vector.shape_cast %1 : vector<2xf32> to vector<2x1xf32>
    %cst_1 = arith.constant 3.125000e-02 : f32
    %3 = vector.broadcast %cst_1 : f32 to vector<2x1xf32>
    %4 = arith.mulf %2, %3 : vector<2x1xf32>
    %5 = arith.mulf %0, %0 : vector<2x128xf32>
    %cst_2 = arith.constant dense<0.000000e+00> : vector<2xf32>
    %6 = vector.multi_reduction <add>, %5, %cst_2 [1] : vector<2x128xf32> to vector<2xf32>
    %7 = vector.shape_cast %6 : vector<2xf32> to vector<2x1xf32>
    %cst_3 = arith.constant 3.125000e-02 : f32
    %8 = vector.broadcast %cst_3 : f32 to vector<2x1xf32>
    %9 = arith.mulf %7, %8 : vector<2x1xf32>
    %10 = arith.mulf %4, %4 : vector<2x1xf32>
    %11 = arith.subf %9, %10 : vector<2x1xf32>
    %cst_4 = arith.constant 0.000000e+00 : f32
    %12 = vector.broadcast %cst_4 : f32 to vector<2x1xf32>
    %13 = arith.maximumf %11, %12 : vector<2x1xf32>
    %14 = vector.broadcast %4 : vector<2x1xf32> to vector<2x128xf32>
    %15 = arith.subf %0, %14 : vector<2x128xf32>
    %cst_5 = arith.constant 9.99999974E-6 : f32
    %16 = vector.broadcast %cst_5 : f32 to vector<2x1xf32>
    %17 = arith.addf %13, %16 : vector<2x1xf32>
    %18 = math.rsqrt %17 : vector<2x1xf32>
    %19 = vector.broadcast %18 : vector<2x1xf32> to vector<2x128xf32>
    %20 = arith.mulf %15, %19 : vector<2x128xf32>
    %c0_6 = arith.constant 0 : index
    %c0_7 = arith.constant 0 : index
    %21 = vector.load %arg3[%c0_6, %c0_7] : memref<1x128xf32, #tpu.memory_space<vmem>>, vector<1x128xf32>
    %22 = vector.broadcast %21 : vector<1x128xf32> to vector<2x128xf32>
    %23 = arith.mulf %20, %22 : vector<2x128xf32>
    %c0_8 = arith.constant 0 : index
    %c0_9 = arith.constant 0 : index
    %24 = vector.load %arg4[%c0_8, %c0_9] : memref<1x128xf32, #tpu.memory_space<vmem>>, vector<1x128xf32>
    %25 = vector.broadcast %24 : vector<1x128xf32> to vector<2x128xf32>
    %26 = arith.addf %23, %25 : vector<2x128xf32>
    %27 = arith.truncf %26 : vector<2x128xf32> to vector<2x128xbf16>
    %c0_10 = arith.constant 0 : index
    %c0_11 = arith.constant 0 : index
    %28 = vector.load %arg5[%c0_10, %c0_11] : memref<128x128xf32, #tpu.memory_space<vmem>>, vector<128x128xf32>
    %29 = arith.truncf %28 : vector<128x128xf32> to vector<128x128xbf16>
    %cst_12 = arith.constant dense<0.000000e+00> : vector<2x128xf32>
    %30 = tpu.matmul %27, %29, %cst_12 {dimension_numbers = #tpu.dot_dimension_numbers<[1], [0], [0], [1], [0, 0, 1, 1], [], []>} : vector<2x128xbf16>, vector<128x128xbf16>, vector<2x128xf32> -> vector<2x128xf32>
    %c0_13 = arith.constant 0 : index
    %c0_14 = arith.constant 0 : index
    %31 = vector.load %arg6[%c0_13, %c0_14] : memref<1x128xf32, #tpu.memory_space<vmem>>, vector<1x128xf32>
    %32 = vector.broadcast %31 : vector<1x128xf32> to vector<2x128xf32>
    %33 = arith.addf %30, %32 : vector<2x128xf32>
    %c0_15 = arith.constant 0 : index
    %c0_16 = arith.constant 0 : index
    %34 = vector.load %arg7[%c0_15, %c0_16] : memref<2x128xf32, #tpu.memory_space<vmem>>, vector<2x128xf32>
    tpu.vector_store %arg7[%c0_15, %c0_16], %33 {strides = array<i32>} : memref<2x128xf32, #tpu.memory_space<vmem>>, vector<2x128xf32>,
    return
  }
  func.func @transform_0(%arg0: i32, %arg1: i32) -> (i32, i32) {
    %c0_i32 = arith.constant 0 : i32
    %c0_i32_0 = arith.constant 0 : i32
    return %arg0, %c0_i32 : i32, i32
  }
  func.func @transform_1(%arg0: i32, %arg1: i32) -> (i32, i32) {
    %c0_i32 = arith.constant 0 : i32
    %c0_i32_0 = arith.constant 0 : i32
    %c0_i32_1 = arith.constant 0 : i32
    return %c0_i32, %c0_i32_0 : i32, i32
  }
  func.func @transform_2(%arg0: i32, %arg1: i32) -> (i32, i32) {
    %c0_i32 = arith.constant 0 : i32
    %c0_i32_0 = arith.constant 0 : i32
    %c0_i32_1 = arith.constant 0 : i32
    return %c0_i32, %c0_i32_0 : i32, i32
  }
  func.func @transform_3(%arg0: i32, %arg1: i32) -> (i32, i32) {
    %c0_i32 = arith.constant 0 : i32
    %c0_i32_0 = arith.constant 0 : i32
    return %c0_i32, %arg1 : i32, i32
  }
  func.func @transform_4(%arg0: i32, %arg1: i32) -> (i32, i32) {
    %c0_i32 = arith.constant 0 : i32
    %c0_i32_0 = arith.constant 0 : i32
    return %c0_i32, %arg1 : i32, i32
  }
  func.func @transform_5(%arg0: i32, %arg1: i32) -> (i32, i32) {
    %c0_i32 = arith.constant 0 : i32
    return %arg0, %arg1 : i32, i32
  }
}

</mosaic_0001>

<bundles_post_ra>
// kernel: vit_forward.14
= control target key start
LH: loop header
LB: loop body
LE: loop exit
PB: predicated region body
PF: predicated region fallthrough
CT: control target
= control target key end

     0   :  { %s1092_s0 = inlined_call_operand.vmem [shape: f32[2,24,1536], index: 0, kind: input, shape index: {}, may-alias: {0,1,2}]   ;;  %s1093_s1 = inlined_call_operand.vmem [shape: f32[2,24,1536], index: 1, kind: input, shape index: {}, may-alias: {0,1,2}]   ;;  %s1094_s2 = inlined_call_operand.vmem [shape: f32[2,24,1536], index: 2, kind: input, shape index: {}, may-alias: {0,1,2}]   ;;  %s1095_s3 = inlined_call_operand.vmem [shape: f32[2,24,512], index: 3, kind: output, shape index: {}]  }
   0x1   :  { %1097 = sst [smem:[#allocation7_spill]] %s1095_s3 }
   0x2   :  { %s889_s12 = smov 0   ;;  %s891_s13 = smov 0  }
   0x3   :  { %s893_s14 = smov 0   ;;  %s895_s15 = smov 0  }
   0x4   :  { %s897_s16 = smov 0   ;;  %s899_s17 = smov 0  }
   0x5   :  { %s901_s18 = smov 0   ;;  %s903_s19 = smov 0  }
   0x6   :  { %s905_s20 = smov 0   ;;  %s907_s21 = smov 0  }
   0x7   :  { %s909_s22 = smov 0  }
   0x8 LB: > { %s22_s24 = sadd.s32 1, %s859_s20  ;;  %s25_s25 = sadd.s32 1, %s863_s21  ;;  %s867_s22 = sphi %s909_s22, %s13_s22   ;;  %s863_s21 = sphi %s907_s21, %s1115_s21   ;;  %s859_s20 = sphi %s905_s20, %s1114_s20   ;;  %s855_s19 = sphi %s903_s19, %s1113_s19   ;;  %s851_s18 = sphi %s901_s18, %s1112_s18   ;;  %s847_s17 = sphi %s899_s17, %s1111_s17   ;;  %s843_s16 = sphi %s897_s16, %s1110_s16   ;;  %s839_s15 = sphi %s895_s15, %s1109_s15   ;;  %s835_s14 = sphi %s893_s14, %s1108_s14   ;;  %s831_s13 = sphi %s891_s13, %s1107_s13   ;;  %s827_s12 = sphi %s889_s12, %s1106_s12  }
   0x9   : > { %p23_p0 = scmp.ge.s32.totalorder %s22_s24, 4  ;;  %s34_s26 = sadd.s32 1, %s847_s17 }
   0xa   : > { %p41_p1 = scmp.ne.s32.totalorder %s847_s17, %s843_s16  ;;  %p42_p2 = scmp.eq.s32.totalorder %s867_s22, 0 }
   0xb   : > { %s1117_s24 = smov (%p23_p0, %s22_s24), 0  ;;  %s1119_s25 = smov (!%p23_p0, %s25_s25), %s863_s21 }
   0xc   : > { %s30_s27 = ssub.s32 %s859_s20, %s1117_s24  ;;  %p27_p3 = scmp.ge.s32.totalorder %s1119_s25, 2 }
   0xd   : > { %s57_s28 = sadd.s32 4, %s859_s20  ;;  %p962_p4 = por %p42_p2, %p41_p1 }
   0xe   : > { %s58_s30 = sadd.s32 4, %s1117_s24  ;;  %s1121_s25 = smov (%p27_p3, %s1119_s25), 0 }
   0xf   : > { %1099 = sst [smem:[#allocation6_spill]] %s1121_s25  ;;  %s60_s4 = ssub.s32 %s57_s28, %s58_s30 }
  0x10   : > { %s64_s5 = sadd.s32 1, %s839_s15  ;;  %s29_s6 = ssub.s32 %s863_s21, %s1121_s25 }
  0x11   : > { %p71_p5 = scmp.ne.s32.totalorder %s839_s15, %s835_s14  ;;  %s31_s7 = sor.u32 %s30_s27, %s29_s6 }
  0x12   : > { %s61_s8 = sor.u32 %s60_s4, %s29_s6  ;;  %p32_p6 = scmp.eq.s32.totalorder %s31_s7, 0 }
  0x13   : > { %p62_p7 = scmp.eq.s32.totalorder %s61_s8, 0  ;;  %p976_p8 = por %p71_p5, %p42_p2 }
  0x14   : > { %s87_s10 = sadd.s32 8, %s859_s20  ;;  %s88_s30 = sadd.s32 8, %s1117_s24 }
  0x15   : > { %s982_s11 = scalar_select %p32_p6, %s847_s17, %s34_s26  }
  0x16   : > { %s985_s28 = scalar_select %p62_p7, %s839_s15, %s64_s5  }
  0x17   : > { %s94_s23 = sadd.s32 1, %s831_s13  ;;  %s90_s25 = ssub.s32 %s87_s10, %s88_s30 }
  0x18   : > { %p101_p9 = scmp.ne.s32.totalorder %s831_s13, %s827_s12  ;;  %s91_s27 = sor.u32 %s90_s25, %s29_s6 }
  0x19   : > { %s1101_s3 = sadd.s32 4294967295, %s867_s22   ;;  %p92_p11 = scmp.eq.s32.totalorder %s91_s27, 0 }
  0x1a   : > { %p133_p10 = scmp.eq.s32.totalorder %s1101_s3, 7  ;;  %p995_p12 = por %p101_p9, %p42_p2 }
  0x1b   : > { %s1007_s26 = scalar_select %p92_p11, %s831_s13, %s94_s23  }
  0x1c   : > { %p1002_p13 = por %p133_p10, %p41_p1  ;;  %p650_p0 = scmp.ge.s32.totalorder %s867_s22, 8 }
  0x1e   : > { %155 = sbr.rel (%p650_p0) target bundleno = 65 (0x41), region = 16 }
  0x23   : > { %158 = sbr.rel (!%p962_p4) target bundleno = 45 (0x2d), region = 20  ;;  %s160_s3 = sand.u32 (%p962_p4), 1, %s847_s17  }
  0x24   : > { %s674_s25 = smul.u32 (%p962_p4), 36, %s863_s21 }
  0x25   : > { %s673_s5 = smul.u32 (%p962_p4), 24, %s160_s3 }
  0x26   : > { %s164_s6 = sadd.s32 (%p962_p4), %s859_s20, %s674_s25 }
  0x27   : > { %s651_s8 = sshll.u32 (%p962_p4), %s164_s6, 3  ;;  %s162_s23 = scalar_lea.vmem (%p962_p4), [#allocation2], %s673_s5 }
  0x28   : > { %s166_s27 = scalar_lea.vmem %s1092_s0, %s651_s8 }
  0x29   : > { %v199_v0 = vld [vmem:[%s166_s27] sm:$0xff] }
  0x2a   : > { %v201_v1 = vld [vmem:[%s166_s27 + $0x60] sm:$0xff]  ;;  %200 = vst [vmem:[%s162_s23] sm:$0xff] %v199_v0 }
  0x2b   : > { %v203_v2 = vld [vmem:[%s166_s27 + $0xc0] sm:$0xff]  ;;  %202 = vst [vmem:[%s162_s23 + $0x8] sm:$0xff] %v201_v1 }
  0x2c   : > { %204 = vst [vmem:[%s162_s23 + $0x10] sm:$0xff] %v203_v2 }
  0x2d PF: > { %210 = sbr.rel (!%p976_p8) target bundleno = 55 (0x37), region = 58  ;;  %s212_s29 = sand.u32 (%p976_p8), 1, %s839_s15  }
  0x2e   : > { %s553_s3 = smul.u32 (%p976_p8), 36, %s863_s21 }
  0x2f   : > { %s675_s25 = smul.u32 (%p976_p8), 24, %s212_s29 }
  0x30   : > { %s554_s6 = sadd.s32 (%p976_p8), %s859_s20, %s553_s3 }
  0x31   : > { %s652_s10 = sshll.u32 (%p976_p8), %s554_s6, 3  ;;  %s214_s5 = scalar_lea.vmem (%p976_p8), [#allocation3], %s675_s25 }
  0x32   : > { %s556_s27 = scalar_lea.vmem %s1093_s1, %s652_s10 }
  0x33   : > { %v653_v3 = vld [vmem:[%s556_s27 + $0x20] sm:$0xff] }
  0x34   : > { %v654_v4 = vld [vmem:[%s556_s27 + $0x80] sm:$0xff]  ;;  %253 = vst [vmem:[%s214_s5] sm:$0xff] %v653_v3 }
  0x35   : > { %v655_v5 = vld [vmem:[%s556_s27 + $0xe0] sm:$0xff]  ;;  %255 = vst [vmem:[%s214_s5 + $0x8] sm:$0xff] %v654_v4 }
  0x36   : > { %257 = vst [vmem:[%s214_s5 + $0x10] sm:$0xff] %v655_v5 }
  0x37 PF: > { %263 = sbr.rel (!%p995_p12) target bundleno = 65 (0x41), region = 96  ;;  %s265_s9 = sand.u32 (%p995_p12), 1, %s831_s13  }
  0x38   : > { %s560_s23 = smul.u32 (%p995_p12), 36, %s863_s21 }
  0x39   : > { %s676_s29 = smul.u32 (%p995_p12), 24, %s265_s9 }
  0x3a   : > { %s561_s3 = sadd.s32 (%p995_p12), %s859_s20, %s560_s23 }
  0x3b   : > { %s656_s6 = sshll.u32 (%p995_p12), %s561_s3, 3  ;;  %s267_s25 = scalar_lea.vmem (%p995_p12), [#allocation4], %s676_s29 }
  0x3c   : > { %s563_s30 = scalar_lea.vmem %s1094_s2, %s656_s6 }
  0x3d   : > { %v657_v6 = vld [vmem:[%s563_s30 + $0x40] sm:$0xff] }
  0x3e   : > { %v658_v7 = vld [vmem:[%s563_s30 + $0xa0] sm:$0xff]  ;;  %306 = vst [vmem:[%s267_s25] sm:$0xff] %v657_v6 }
  0x3f   : > { %v659_v8 = vld [vmem:[%s563_s30 + $0x100] sm:$0xff]  ;;  %308 = vst [vmem:[%s267_s25 + $0x8] sm:$0xff] %v658_v7 }
  0x40   : > { %310 = vst [vmem:[%s267_s25 + $0x10] sm:$0xff] %v659_v8 }
  0x41 PF: > { %p660_p1 = scmp.ge.s32.totalorder %s867_s22, 1  ;;  %p315_p2 = scmp.lt.s32.totalorder %s867_s22, 9 }
  0x43   : > { %p316_p3 = pnand %p660_p1, %p315_p2 }
  0x44   : > { %s329_s4 = sand.u32 (!%p316_p3), 1, %s835_s14   ;;  %s322_s5 = sand.u32 (!%p316_p3), 1, %s843_s16  }
  0x45   : > { %319 = sbr.rel (%p316_p3) target bundleno = 624 (0x270), region = 134  ;;  %s336_s14 = sand.u32 (!%p316_p3), 1, %s827_s12  }
  0x46   : > { %s678_s27 = smul.u32 (!%p316_p3), 24, %s329_s4 }
  0x47   : > { %s1038_s23 = smul.u32 (!%p316_p3), 24, %s322_s5 }
  0x48   : > { %s331_s9 = scalar_lea.vmem (!%p316_p3), [#allocation3], %s678_s27  ;;  %s679_s16 = smul.u32 (!%p316_p3), 24, %s336_s14 }
  0x49   : > { %s324_s29 = scalar_lea.vmem (!%p316_p3), [#allocation2], %s1038_s23  ;;  %s365_s12 = scalar_lea.vmem (!%p316_p3), [#allocation5], %s1038_s23 }
  0x4a   : > { %v373_v9 = vld [vmem:[%s331_s9 + $0x10] sm:$0xff]  ;;  %v372_v10 = vld [vmem:[%s331_s9 + $0x8] sm:$0xff]  ;;  %v371_v11 = vld [vmem:[%s331_s9] sm:$0xff]  ;;  %v403_v15 = vlaneseq  ;;  %vm409_vm1 = vcmask 195584   ;;  %s338_s3 = scalar_lea.vmem [#allocation4], %s679_s16  ;;  %s680_s6 = smul.u32 (%p1002_p13), 12, %s855_s19 }
  0x4b   : > { %390 = vmatpush.xpose.msra.mxu0 %v373_v9  ;;  %667 = vmatpush.xpose.msra.mxu2 %v373_v9  ;;  %v368_v12 = vld [vmem:[%s324_s29] sm:$0xff]  ;;  %v369_v13 = vld [vmem:[%s324_s29 + $0x8] sm:$0xff]  ;;  %v370_v14 = vld [vmem:[%s324_s29 + $0x10] sm:$0xff]  ;;  %s1104_s4 = sld [smem:[#allocation7_spill]] (%p1002_p13) }
  0x4c   : > { %v404_v16 = vand.u32 127, %v403_v15  ;;  %v376_v41 = vld [vmem:[%s338_s3 + $0x10] sm:$0xff]  ;;  %v375_v42 = vld [vmem:[%s338_s3 + $0x8] sm:$0xff]  ;;  %v374_v43 = vld [vmem:[%s338_s3] sm:$0xff]  ;;  %s489_s10 = sadd.s32 (%p1002_p13), %s851_s18, %s680_s6 }
  0x4d   : > { %670 = vmatpush.msra.mxu3 %v376_v41  ;;  %465 = vmatpush.msra.mxu1 %v376_v41  ;;  %s664_s8 = sshll.u32 (%p1002_p13), %s489_s10, 3 }
  0x4e   : > { %vm405_vm0 = vcmp.lt.s32.totalorder %v404_v16, 17 }
  0x4f   : > { %391 = vmatpush.xpose.msra.mxu0 %v372_v10  ;;  %668 = vmatpush.xpose.msra.mxu2 %v372_v10 }
  0x50   : > { %671 = vmatpush.msra.mxu3 %v375_v42  ;;  %466 = vmatpush.msra.mxu1 %v375_v42 }
  0x51   : > { %s491_s27 = scalar_lea.vmem (%p1002_p13), %s1104_s4, %s664_s8 }
  0x52   : > { %672 = vmatpush.msra.mxu3 %v374_v43  ;;  %467 = vmatpush.msra.mxu1 %v374_v43 }
  0x53   : > { %392 = vmatpush.xpose.msra.mxu0 %v371_v11  ;;  %669 = vmatpush.xpose.msra.mxu2 %v371_v11 }
  0x56   : > { %393 = vmatmul.f32.vlgmr.msra.gmra.mxu0 %v368_v12  ;;  %396 = vmatmul.f32.vlgmr.msra.gmra.mxu2 %v369_v13 }
  0x5e   : > { %399 = vmatmul.f32.gmra.mxu2 %v370_v14 }
  0xd3   : > { %v394_v17 = vpop.f32.mrf.mxu0 }
  0xd4   : > { %v406_v18 = vsel %vm405_vm0, %v394_v17, -1e+30 }
  0xd5   : > { %v410_v19 = vsel %vm409_vm1, %v406_v18, -inf }
  0xd6   : > { %411 = vmax.xlane.f32.xlu1 %v410_v19 }
  0xd9   : > { %v397_v20 = vpop.f32.mrf.mxu2 }
  0xda   : > { %v407_v21 = vsel %vm405_vm0, %v397_v20, -1e+30 }
  0xdb   : > { %v413_v22 = vsel %vm409_vm1, %v407_v21, -inf }
  0xdc   : > { %414 = vmax.xlane.f32.xlu0 %v413_v22 }
  0xe1   : > { %v400_v23 = vpop.f32.mrf.mxu2 }
  0xe2   : > { %v408_v24 = vsel %vm405_vm0, %v400_v23, -1e+30 }
  0xe3   : > { %v416_v25 = vsel %vm409_vm1, %v408_v24, -inf }
  0xe4   : > { %417 = vmax.xlane.f32.xlu0 %v416_v25 }
 0x149   : > { %v412_v29 = vpop.xlane.xlu1 %411 }
 0x14a   : > { %v419_v33 = vsub.f32 %v406_v18, %v412_v29 }
 0x14c   : > { %v422_v36 = vmul.f32 1.442695, %v419_v33 }
 0x14f   : > { %v415_v26 = vpop.xlane.xlu0 %414 }
 0x150   : > { %v420_v27 = vsub.f32 %v407_v21, %v415_v26 }
 0x152   : > { %v424_v28 = vmul.f32 1.442695, %v420_v27 }
 0x154   : > { %769 = vpow2.f32 %v424_v28 }
 0x157   : > { %v418_v30 = vpop.xlane.xlu0 %417 }
 0x158   : > { %v421_v31 = vsub.f32 %v408_v24, %v418_v30 }
 0x15a   : > { %v770_v32 = vpop.eup %769  ;;  %v426_v34 = vmul.f32 1.442695, %v421_v31 }
 0x15b   : > { %v431_v35 = vsel %vm409_vm1, %v770_v32, 0.0 }
 0x15c   : > { %771 = vpow2.f32 %v426_v34  ;;  %432 = vadd.xlane.f32.xlu1 %v431_v35 }
 0x15d   : > { %773 = vpow2.f32 %v422_v36 }
 0x162   : > { %v772_v37 = vpop.eup %771 }
 0x163   : > { %v434_v38 = vsel %vm409_vm1, %v772_v37, 0.0  ;;  %v774_v39 = vpop.eup %773 }
 0x164   : > { %435 = vadd.xlane.f32.xlu2 %v434_v38  ;;  %v428_v40 = vsel %vm409_vm1, %v774_v39, 0.0 }
 0x16c   : > { %429 = vadd.xlane.f32.xlu2 %v428_v40 }
 0x1cf   : > { %v433_v44 = vpop.xlane.xlu1 %432 }
 0x1d0   : > { %775 = vrcp.f32 %v433_v44 }
 0x1d6   : > { %v776_v45 = vpop.eup %775 }
 0x1d7   : > { %v436_v46 = vpop.xlane.xlu2 %435  ;;  %v441_v47 = vmul.f32 %v776_v45, %v770_v32 }
 0x1d8   : > { %777 = vrcp.f32 %v436_v46 }
 0x1d9   : > { %662 = vmatmul.msk.f32.vlgmr.msra.gmra.mxu3 %vm409_vm1, %v441_v47 }
 0x1de   : > { %v778_v48 = vpop.eup %777 }
 0x1df   : > { %v430_v49 = vpop.xlane.xlu2 %429  ;;  %v442_v50 = vmul.f32 %v778_v48, %v772_v37 }
 0x1e0   : > { %779 = vrcp.f32 %v430_v49 }
 0x1e1   : > { %663 = vmatmul.msk.f32.gmra.mxu3 %vm409_vm1, %v442_v50 }
 0x1e6   : > { %v780_v51 = vpop.eup %779 }
 0x1e7   : > { %v440_v52 = vmul.f32 %v780_v51, %v774_v39 }
 0x1e9   : > { %661 = vmatmul.msk.f32.vlgmr.msra.gmra.mxu1 %vm409_vm1, %v440_v52 }
 0x25c   : > { %v472_v53 = vpop.f32.mrf.mxu3 }
 0x25d   : > { %479 = vst [vmem:[%s365_s12 + $0x8] sm:$0xff] %v472_v53 }
 0x263   : > { %487 = sbr.rel (!%p1002_p13) target bundleno = 624 (0x270), region = 150 }
 0x264   : > { %v475_v54 = vpop.f32.mrf.mxu3  ;;  %v526_v57 = vld [vmem:[%s365_s12 + $0x8] sm:$0xff] (%p1002_p13) }
 0x265   : > { %480 = vst [vmem:[%s365_s12 + $0x10] sm:$0xff] %v475_v54 }
 0x266   : > { %v469_v55 = vpop.f32.mrf.mxu1  ;;  %527 = vst [vmem:[%s491_s27 + $0x20] sm:$0xff] (%p1002_p13), %v526_v57 }
 0x267   : > { %478 = vst [vmem:[%s365_s12] sm:$0xff] %v469_v55 }
 0x26c   : > { %v528_v58 = vld [vmem:[%s365_s12 + $0x10] sm:$0xff] }
 0x26d   : > { %529 = vst [vmem:[%s491_s27 + $0x40] sm:$0xff] %v528_v58 }
 0x26e   : > { %v524_v56 = vld [vmem:[%s365_s12] sm:$0xff] }
 0x26f   : > { %525 = vst [vmem:[%s491_s27] sm:$0xff] %v524_v56 }
 0x270 PF: > { %s13_s22 = sadd.s32 1, %s867_s22   ;;  %s1105_s7 = sld [smem:[#allocation6_spill]] }
 0x271   : > { %p10_p4 = scmp.ge.s32.totalorder %s13_s22, 10   ;;  %s1106_s12 = smov %s831_s13 }
 0x272   : > { %s1107_s13 = smov %s1007_s26  ;;  %s1108_s14 = smov %s839_s15 }
 0x273   : > { %s1109_s15 = smov %s985_s28  ;;  %s1110_s16 = smov %s847_s17 }
 0x274   : > { %s1111_s17 = smov %s982_s11  ;;  %s1112_s18 = smov %s859_s20 }
 0x275   : > { %s1113_s19 = smov %s863_s21  ;;  %s1114_s20 = smov %s1117_s24 }
 0x276   : > { %s1115_s21 = smov %s1105_s7  ;;  %12 = sbr.rel (!%p10_p4) target bundleno = 8 (0x8), region = 235 }

// kernel: vit_forward.12
= control target key start
LH: loop header
LB: loop body
LE: loop exit
PB: predicated region body
PF: predicated region fallthrough
CT: control target
= control target key end

     0   :  { %s520_s18 = smov 0   ;;  %s522_s19 = smov 0   ;;  %s607_s0 = inlined_call_operand.vmem [shape: f32[32,128], index: 0, kind: input, shape index: {}]   ;;  %s608_s1 = inlined_call_operand.vmem [shape: f32[1,128], index: 1, kind: input, shape index: {}]   ;;  %s609_s2 = inlined_call_operand.vmem [shape: f32[1,128], index: 2, kind: input, shape index: {}]   ;;  %s610_s3 = inlined_call_operand.vmem [shape: f32[128,128], index: 3, kind: input, shape index: {}]   ;;  %s611_s4 = inlined_call_operand.vmem [shape: f32[1,128], index: 4, kind: input, shape index: {}]   ;;  %s612_s5 = inlined_call_operand.vmem [shape: f32[32,128], index: 5, kind: output, shape index: {}]  }
   0x1   :  { %s524_s20 = smov 0  }
   0x2 LB: > { %s27_s1 = sadd.s32 1, %s484_s19  ;;  %p434_p0 = scmp.ge.s32.totalorder %s488_s20, 1  ;;  %s488_s20 = sphi %s524_s20, %s15_s20   ;;  %s484_s19 = sphi %s522_s19, %s614_s19   ;;  %s480_s18 = sphi %s520_s18, %s613_s18  }
   0x3   : > { %p29_p1 = scmp.ge.s32.totalorder %s27_s1, 2  ;;  %p219_p2 = scmp.lt.s32.totalorder %s488_s20, 3 }
   0x5   : > { %s616_s1 = smov (%p29_p1, %s27_s1), 0  ;;  %p220_p3 = pnand %p434_p0, %p219_p2 }
   0x6   : > { %s435_s11 = sshll.u32 (!%p220_p3), %s480_s18, 1 }
   0x7   : > { %223 = sbr.rel (%p220_p3) target bundleno = 183 (0xb7), region = 40  ;;  %p258_p4 = scmp.lt.s32.totalorder (!%p220_p3), %s435_s11, 3 }
   0xc   : > { %v296_v0 = vld [vmem:[%s610_s3 + $0x70] sm:$0xff]  ;;  %v297_v1 = vld [vmem:[%s610_s3 + $0x78] sm:$0xff]  ;;  %v294_v2 = vld [vmem:[%s610_s3 + $0x60] sm:$0xff]  ;;  %s618_s11 = smov (!%p258_p4, %s435_s11), 3 }
   0xd   : > { %v305_v3 = vpack.c.bf16 %v297_v1, %v296_v0  ;;  %v295_v4 = vld [vmem:[%s610_s3 + $0x68] sm:$0xff]  ;;  %v292_v6 = vld [vmem:[%s610_s3 + $0x50] sm:$0xff]  ;;  %v293_v7 = vld [vmem:[%s610_s3 + $0x58] sm:$0xff]  ;;  %s436_s25 = sshll.u32 %s618_s11, 3 }
   0xe   : > { %v304_v5 = vpack.c.bf16 %v295_v4, %v294_v2  ;;  %v303_v8 = vpack.c.bf16 %v293_v7, %v292_v6  ;;  %v290_v9 = vld [vmem:[%s610_s3 + $0x40] sm:$0xff]  ;;  %v291_v10 = vld [vmem:[%s610_s3 + $0x48] sm:$0xff]  ;;  %v288_v12 = vld [vmem:[%s610_s3 + $0x30] sm:$0xff]  ;;  %s261_s7 = scalar_lea.vmem %s607_s0, %s436_s25  ;;  %s277_s12 = scalar_lea.vmem %s612_s5, %s436_s25 }
   0xf   : > { %310 = vmatpush.bf16.msra.mxu0 %v305_v3  ;;  %v302_v11 = vpack.c.bf16 %v291_v10, %v290_v9  ;;  %v289_v13 = vld [vmem:[%s610_s3 + $0x38] sm:$0xff]  ;;  %v286_v15 = vld [vmem:[%s610_s3 + $0x20] sm:$0xff]  ;;  %v287_v16 = vld [vmem:[%s610_s3 + $0x28] sm:$0xff] }
  0x10   : > { %v301_v14 = vpack.c.bf16 %v289_v13, %v288_v12  ;;  %v300_v17 = vpack.c.bf16 %v287_v16, %v286_v15  ;;  %v284_v18 = vld [vmem:[%s610_s3 + $0x10] sm:$0xff]  ;;  %v285_v19 = vld [vmem:[%s610_s3 + $0x18] sm:$0xff]  ;;  %v282_v21 = vld [vmem:[%s610_s3] sm:$0xff] }
  0x11   : > { %v299_v20 = vpack.c.bf16 %v285_v19, %v284_v18  ;;  %v283_v22 = vld [vmem:[%s610_s3 + $0x8] sm:$0xff]  ;;  %v279_v24 = vld [vmem:[%s261_s7] sm:$0xff] }
  0x12   : > { %v298_v23 = vpack.c.bf16 %v283_v22, %v282_v21  ;;  %v280_v25 = vld [vmem:[%s261_s7 + $0x8] sm:$0xff]  ;;  %v465_v27 = vld [vmem:[%s611_s4] ss:$0 sm:$0xff] }
  0x13   : > { %311 = vmatpush.bf16.msra.mxu0 %v304_v5  ;;  %v281_v26 = vpack.c.bf16 %v280_v25, %v279_v24 }
  0x17   : > { %312 = vmatpush.bf16.msra.mxu0 %v303_v8 }
  0x1b   : > { %313 = vmatpush.bf16.msra.mxu0 %v302_v11 }
  0x1f   : > { %314 = vmatpush.bf16.msra.mxu0 %v301_v14 }
  0x23   : > { %315 = vmatpush.bf16.msra.mxu0 %v300_v17 }
  0x27   : > { %316 = vmatpush.bf16.msra.mxu0 %v299_v20 }
  0x2b   : > { %317 = vmatpush.bf16.msra.mxu0 %v298_v23 }
  0x2e   : > { %318 = vmatmul.bf16.vlgmr.msra.gmra.mxu0 %v281_v26 }
  0xab   : > { %v319_v28 = vpop.f32.mrf.mxu0 }
  0xac   : > { %v320_v29 = vadd.f32 %v465_v27, %v319_v28 }
  0xae   : > { %324 = vst [vmem:[%s277_s12] sm:$0xff] %v320_v29 }
  0xb3   : > { %v321_v30 = vpop.f32.mrf.mxu0 }
  0xb4   : > { %v322_v31 = vadd.f32 %v465_v27, %v321_v30 }
  0xb6   : > { %325 = vst [vmem:[%s277_s12 + $0x8] sm:$0xff] %v322_v31 }
  0xb7 PF: > { %s15_s20 = sadd.s32 1, %s488_s20   ;;  %s613_s18 = smov %s484_s19 }
  0xb8   : > { %p12_p5 = scmp.ge.s32.totalorder %s15_s20, 4   ;;  %s614_s19 = smov %s616_s1 }
  0xba   :  { %14 = sbr.rel (!%p12_p5) target bundleno = 2 (0x2), region = 76 }

// kernel: vit_forward.13
= control target key start
LH: loop header
LB: loop body
LE: loop exit
PB: predicated region body
PF: predicated region fallthrough
CT: control target
= control target key end

     0   :  { %s892_s18 = smov 0   ;;  %s894_s19 = smov 0   ;;  %s1172_s0 = inlined_call_operand.vmem [shape: f32[48,128], index: 0, kind: input, shape index: {}]   ;;  %s1173_s1 = inlined_call_operand.vmem [shape: f32[1,128], index: 1, kind: input, shape index: {}]   ;;  %s1174_s2 = inlined_call_operand.vmem [shape: f32[1,128], index: 2, kind: input, shape index: {}]   ;;  %s1175_s3 = inlined_call_operand.vmem [shape: f32[128,1536], index: 3, kind: input, shape index: {}]   ;;  %s1176_s4 = inlined_call_operand.vmem [shape: f32[1,1536], index: 4, kind: input, shape index: {}]   ;;  %s1177_s5 = inlined_call_operand.vmem [shape: f32[48,1536], index: 5, kind: output, shape index: {}]  }
   0x1   :  { %s896_s20 = smov 0   ;;  %s898_s21 = smov 0  }
   0x2   :  { %s900_s22 = smov 0   ;;  %s902_s23 = smov 0  }
   0x3   :  { %s904_s24 = smov 0   ;;  %s906_s25 = smov 0  }
   0x4   :  { %s908_s26 = smov 0  }
   0x5 LB: > { %s675_s27 = sadd.s32 4294967295, %s860_s26   ;;  %s24_s28 = sadd.s32 1, %s852_s24  ;;  %s860_s26 = sphi %s908_s26, %s15_s26   ;;  %s856_s25 = sphi %s906_s25, %s1186_s25   ;;  %s852_s24 = sphi %s904_s24, %s1185_s24   ;;  %s848_s23 = sphi %s902_s23, %s1184_s23   ;;  %s844_s22 = sphi %s900_s22, %s1183_s22   ;;  %s840_s21 = sphi %s898_s21, %s1182_s21   ;;  %s836_s20 = sphi %s896_s20, %s1181_s20   ;;  %s832_s19 = sphi %s894_s19, %s1180_s19   ;;  %s828_s18 = sphi %s892_s18, %s1179_s18  }
   0x6   : > { %p25_p0 = scmp.ge.s32.totalorder %s24_s28, 6  ;;  %s27_s29 = sadd.s32 1, %s856_s25 }
   0x7   : > { %s102_s30 = sadd.s32 1, %s840_s21  ;;  %p109_p1 = scmp.ne.s32.totalorder %s840_s21, %s836_s20 }
   0x8   : > { %s1188_s28 = smov (%p25_p0, %s24_s28), 0  ;;  %s1190_s29 = smov (!%p25_p0, %s27_s29), %s856_s25 }
   0x9   : > { %s99_s6 = ssub.s32 %s852_s24, %s1188_s28  ;;  %p110_p2 = scmp.eq.s32.totalorder %s860_s26, 0 }
   0xa   : > { %p29_p3 = scmp.ge.s32.totalorder %s1190_s29, 2  ;;  %p100_p4 = scmp.eq.s32.totalorder %s99_s6, 0 }
   0xb   : > { %p111_p5 = por %p110_p2, %p109_p1  ;;  %s156_s7 = sadd.s32 1, %s832_s19 }
   0xc   : > { %s1192_s29 = smov (%p29_p3, %s1190_s29), 0  ;;  %p166_p6 = scmp.ne.s32.totalorder %s832_s19, %s828_s18 }
   0xd   : > { %s953_s8 = scalar_select %p100_p4, %s840_s21, %s102_s30  }
   0xe   : > { %s151_s9 = ssub.s32 %s856_s25, %s1192_s29  ;;  %p167_p7 = scmp.eq.s32.totalorder %s675_s27, 11 }
   0xf   : > { %s153_s10 = sor.u32 %s151_s9, %s99_s6  ;;  %p678_p10 = scmp.ge.s32.totalorder %s860_s26, 12 }
  0x10   : > { %p154_p8 = scmp.eq.s32.totalorder %s153_s10, 0  ;;  %p959_p9 = por %p167_p7, %p166_p6 }
  0x11   : > { %195 = sbr.rel (%p678_p10) target bundleno = 58 (0x3a), region = 24 }
  0x12   : > { %s964_s12 = scalar_select %p154_p8, %s832_s19, %s156_s7  }
  0x16   : > { %207 = sbr.rel (!%p111_p5) target bundleno = 58 (0x3a), region = 32  ;;  %s209_s13 = sand.u32 (%p111_p5), 1, %s840_s21  }
  0x17   : > { %s690_s14 = sshll.u32 (%p111_p5), %s852_s24, 4  ;;  %s679_s15 = sshll.u32 (%p111_p5), %s209_s13, 8 }
  0x18   : > { %s972_s27 = scalar_lea.vmem (%p111_p5), %s1175_s3, %s690_s14  ;;  %s977_s30 = scalar_lea.vmem (%p111_p5), [#allocation2], %s679_s15 }
  0x19   : > { %v227_v0 = vld [vmem:[%s972_s27] sm:$0xff] (%p111_p5)  ;;  %v229_v1 = vld [vmem:[%s972_s27 + $0x8] sm:$0xff] (%p111_p5) }
  0x1a   : > { %v231_v2 = vld [vmem:[%s972_s27 + $0x60] sm:$0xff] (%p111_p5)  ;;  %228 = vst [vmem:[%s977_s30] sm:$0xff] (%p111_p5), %v227_v0  ;;  %v233_v3 = vld [vmem:[%s972_s27 + $0x68] sm:$0xff] (%p111_p5) }
  0x1b   : > { %230 = vst [vmem:[%s977_s30 + $0x8] sm:$0xff] %v229_v1  ;;  %v235_v4 = vld [vmem:[%s972_s27 + $0xc0] sm:$0xff]  ;;  %v237_v5 = vld [vmem:[%s972_s27 + $0xc8] sm:$0xff] }
  0x1c   : > { %232 = vst [vmem:[%s977_s30 + $0x10] sm:$0xff] %v231_v2  ;;  %v239_v6 = vld [vmem:[%s972_s27 + $0x120] sm:$0xff]  ;;  %v241_v7 = vld [vmem:[%s972_s27 + $0x128] sm:$0xff] }
  0x1d   : > { %234 = vst [vmem:[%s977_s30 + $0x18] sm:$0xff] %v233_v3  ;;  %v243_v8 = vld [vmem:[%s972_s27 + $0x180] sm:$0xff]  ;;  %v245_v9 = vld [vmem:[%s972_s27 + $0x188] sm:$0xff] }
  0x1e   : > { %236 = vst [vmem:[%s977_s30 + $0x20] sm:$0xff] %v235_v4  ;;  %v247_v10 = vld [vmem:[%s972_s27 + $0x1e0] sm:$0xff]  ;;  %v249_v11 = vld [vmem:[%s972_s27 + $0x1e8] sm:$0xff] }
  0x1f   : > { %238 = vst [vmem:[%s977_s30 + $0x28] sm:$0xff] %v237_v5  ;;  %v251_v12 = vld [vmem:[%s972_s27 + $0x240] sm:$0xff]  ;;  %v253_v13 = vld [vmem:[%s972_s27 + $0x248] sm:$0xff] }
  0x20   : > { %240 = vst [vmem:[%s977_s30 + $0x30] sm:$0xff] %v239_v6  ;;  %v255_v14 = vld [vmem:[%s972_s27 + $0x2a0] sm:$0xff]  ;;  %v257_v15 = vld [vmem:[%s972_s27 + $0x2a8] sm:$0xff] }
  0x21   : > { %242 = vst [vmem:[%s977_s30 + $0x38] sm:$0xff] %v241_v7  ;;  %v259_v16 = vld [vmem:[%s972_s27 + $0x300] sm:$0xff]  ;;  %v261_v17 = vld [vmem:[%s972_s27 + $0x308] sm:$0xff] }
  0x22   : > { %244 = vst [vmem:[%s977_s30 + $0x40] sm:$0xff] %v243_v8  ;;  %v263_v18 = vld [vmem:[%s972_s27 + $0x360] sm:$0xff]  ;;  %v265_v19 = vld [vmem:[%s972_s27 + $0x368] sm:$0xff] }
  0x23   : > { %246 = vst [vmem:[%s977_s30 + $0x48] sm:$0xff] %v245_v9  ;;  %v267_v20 = vld [vmem:[%s972_s27 + $0x3c0] sm:$0xff]  ;;  %v269_v21 = vld [vmem:[%s972_s27 + $0x3c8] sm:$0xff] }
  0x24   : > { %248 = vst [vmem:[%s977_s30 + $0x50] sm:$0xff] %v247_v10  ;;  %v271_v22 = vld [vmem:[%s972_s27 + $0x420] sm:$0xff]  ;;  %v273_v23 = vld [vmem:[%s972_s27 + $0x428] sm:$0xff] }
  0x25   : > { %250 = vst [vmem:[%s977_s30 + $0x58] sm:$0xff] %v249_v11  ;;  %v275_v24 = vld [vmem:[%s972_s27 + $0x480] sm:$0xff]  ;;  %v277_v25 = vld [vmem:[%s972_s27 + $0x488] sm:$0xff] }
  0x26   : > { %252 = vst [vmem:[%s977_s30 + $0x60] sm:$0xff] %v251_v12  ;;  %v279_v26 = vld [vmem:[%s972_s27 + $0x4e0] sm:$0xff]  ;;  %v281_v27 = vld [vmem:[%s972_s27 + $0x4e8] sm:$0xff] }
  0x27   : > { %254 = vst [vmem:[%s977_s30 + $0x68] sm:$0xff] %v253_v13  ;;  %v283_v28 = vld [vmem:[%s972_s27 + $0x540] sm:$0xff]  ;;  %v285_v29 = vld [vmem:[%s972_s27 + $0x548] sm:$0xff] }
  0x28   : > { %256 = vst [vmem:[%s977_s30 + $0x70] sm:$0xff] %v255_v14  ;;  %v287_v30 = vld [vmem:[%s972_s27 + $0x5a0] sm:$0xff]  ;;  %v289_v31 = vld [vmem:[%s972_s27 + $0x5a8] sm:$0xff] }
  0x29   : > { %258 = vst [vmem:[%s977_s30 + $0x78] sm:$0xff] %v257_v15 }
  0x2a   : > { %260 = vst [vmem:[%s977_s30 + $0x80] sm:$0xff] %v259_v16 }
  0x2b   : > { %262 = vst [vmem:[%s977_s30 + $0x88] sm:$0xff] %v261_v17 }
  0x2c   : > { %264 = vst [vmem:[%s977_s30 + $0x90] sm:$0xff] %v263_v18 }
  0x2d   : > { %266 = vst [vmem:[%s977_s30 + $0x98] sm:$0xff] %v265_v19 }
  0x2e   : > { %268 = vst [vmem:[%s977_s30 + $0xa0] sm:$0xff] %v267_v20 }
  0x2f   : > { %270 = vst [vmem:[%s977_s30 + $0xa8] sm:$0xff] %v269_v21 }
  0x30   : > { %272 = vst [vmem:[%s977_s30 + $0xb0] sm:$0xff] %v271_v22 }
  0x31   : > { %274 = vst [vmem:[%s977_s30 + $0xb8] sm:$0xff] %v273_v23 }
  0x32   : > { %276 = vst [vmem:[%s977_s30 + $0xc0] sm:$0xff] %v275_v24 }
  0x33   : > { %278 = vst [vmem:[%s977_s30 + $0xc8] sm:$0xff] %v277_v25 }
  0x34   : > { %280 = vst [vmem:[%s977_s30 + $0xd0] sm:$0xff] %v279_v26 }
  0x35   : > { %282 = vst [vmem:[%s977_s30 + $0xd8] sm:$0xff] %v281_v27 }
  0x36   : > { %284 = vst [vmem:[%s977_s30 + $0xe0] sm:$0xff] %v283_v28 }
  0x37   : > { %286 = vst [vmem:[%s977_s30 + $0xe8] sm:$0xff] %v285_v29 }
  0x38   : > { %288 = vst [vmem:[%s977_s30 + $0xf0] sm:$0xff] %v287_v30 }
  0x39   : > { %290 = vst [vmem:[%s977_s30 + $0xf8] sm:$0xff] %v289_v31 }
  0x3a PF: > { %p682_p11 = scmp.ge.s32.totalorder %s860_s26, 1  ;;  %p303_p12 = scmp.lt.s32.totalorder %s860_s26, 13 }
  0x3c   : > { %p304_p13 = pnand %p682_p11, %p303_p12 }
  0x3d   : > { %s345_s6 = smul.u32 (!%p304_p13), 3, %s848_s23  ;;  %s310_s14 = sand.u32 (!%p304_p13), 1, %s836_s20  }
  0x3e   : > { %307 = sbr.rel (%p304_p13) target bundleno = 377 (0x179), region = 59  ;;  %s683_s15 = sshll.u32 (!%p304_p13), %s310_s14, 8 }
  0x3f   : > { %p346_p0 = scmp.lt.s32.totalorder (!%p304_p13), %s345_s6, 5  ;;  %s1062_s16 = scalar_lea.vmem (!%p304_p13), [#allocation2], %s683_s15 }
  0x40   : > { %s342_s14 = sand.u32 (!%p304_p13), 1, %s828_s18  }
  0x41   : > { %s707_s15 = smul.u32 (!%p304_p13), 48, %s342_s14 }
  0x43   : > { %s1194_s6 = smov (!%p346_p0, %s345_s6), 5  ;;  %v475_v38 = vld [vmem:[%s1062_s16 + $0xe0] sm:$0xff]  ;;  %v477_v39 = vld [vmem:[%s1062_s16 + $0xf0] sm:$0xff]  ;;  %v476_v40 = vld [vmem:[%s1062_s16 + $0xe8] sm:$0xff]  ;;  %s709_s18 = smul.u32 (%p959_p9), 36, %s848_s23 }
  0x44   : > { %s684_s7 = sshll.u32 %s1194_s6, 3  ;;  %v493_v41 = vpack.c.bf16 %v477_v39, %v475_v38  ;;  %v478_v42 = vld [vmem:[%s1062_s16 + $0xf8] sm:$0xff]  ;;  %v471_v44 = vld [vmem:[%s1062_s16 + $0xc0] sm:$0xff]  ;;  %v473_v45 = vld [vmem:[%s1062_s16 + $0xd0] sm:$0xff]  ;;  %s1116_s6 = sshll.u32 %s844_s22, 1 }
  0x45   : > { %s349_s13 = scalar_lea.vmem %s1172_s0, %s684_s7  ;;  %v494_v43 = vpack.c.bf16 %v478_v42, %v476_v40  ;;  %v472_v46 = vld [vmem:[%s1062_s16 + $0xc8] sm:$0xff]  ;;  %v491_v47 = vpack.c.bf16 %v473_v45, %v471_v44  ;;  %v474_v48 = vld [vmem:[%s1062_s16 + $0xd8] sm:$0xff]  ;;  %v467_v50 = vld [vmem:[%s1062_s16 + $0xa0] sm:$0xff]  ;;  %p353_p1 = scmp.lt.s32.totalorder %s1116_s6, 11 }
  0x46   : > { %v1046_v32 = vld [vmem:[%s349_s13 + $0x10] sm:$0xff]  ;;  %v1048_v33 = vld [vmem:[%s349_s13] sm:$0xff]  ;;  %v1054_v35 = vld [vmem:[%s349_s13 + $0x8] sm:$0xff]  ;;  %691 = vmatpush.bf16.msra.mxu2 %v493_v41  ;;  %501 = vmatpush.bf16.msra.mxu0 %v493_v41  ;;  %v492_v49 = vpack.c.bf16 %v474_v48, %v472_v46  ;;  %s553_s22 = sadd.s32 (%p959_p9), %s709_s18, %s1116_s6 }
  0x47   : > { %366 = vadd.xlane.f32.xlu0 %v1046_v32  ;;  %362 = vadd.xlane.f32.xlu1 %v1048_v33  ;;  %v371_v34 = vmul.f32 %v1048_v33, %v1048_v33  ;;  %v373_v36 = vmul.f32 %v1046_v32, %v1046_v32  ;;  %v372_v37 = vmul.f32 %v1054_v35, %v1054_v35  ;;  %v469_v51 = vld [vmem:[%s1062_s16 + $0xb0] sm:$0xff]  ;;  %v468_v52 = vld [vmem:[%s1062_s16 + $0xa8] sm:$0xff]  ;;  %v470_v54 = vld [vmem:[%s1062_s16 + $0xb8] sm:$0xff]  ;;  %s354_s7 = scalar_select %p353_p1, %s1116_s6, 11 }
  0x48   : > { %699 = vmatpush.bf16.msra.mxu3 %v494_v43  ;;  %519 = vmatpush.bf16.msra.mxu1 %v494_v43  ;;  %v489_v53 = vpack.c.bf16 %v469_v51, %v467_v50  ;;  %v490_v55 = vpack.c.bf16 %v470_v54, %v468_v52  ;;  %v463_v56 = vld [vmem:[%s1062_s16 + $0x80] sm:$0xff]  ;;  %v465_v57 = vld [vmem:[%s1062_s16 + $0x90] sm:$0xff]  ;;  %v464_v58 = vld [vmem:[%s1062_s16 + $0x88] sm:$0xff]  ;;  %s687_s20 = sshll.u32 (%p959_p9), %s553_s22, 3 }
  0x49   : > { %374 = vadd.xlane.f32.xlu2 %v371_v34  ;;  %v487_v59 = vpack.c.bf16 %v465_v57, %v463_v56  ;;  %v466_v60 = vld [vmem:[%s1062_s16 + $0x98] sm:$0xff]  ;;  %v459_v62 = vld [vmem:[%s1062_s16 + $0x60] sm:$0xff]  ;;  %v461_v63 = vld [vmem:[%s1062_s16 + $0x70] sm:$0xff]  ;;  %s355_s13 = scalar_lea.vmem %s1176_s4, %s354_s7  ;;  %s555_s30 = scalar_lea.vmem (%p959_p9), %s1177_s5, %s687_s20 }
  0x4a   : > { %692 = vmatpush.bf16.msra.mxu2 %v491_v47  ;;  %502 = vmatpush.bf16.msra.mxu0 %v491_v47  ;;  %v488_v61 = vpack.c.bf16 %v466_v60, %v464_v58  ;;  %v460_v0 = vld [vmem:[%s1062_s16 + $0x68] sm:$0xff]  ;;  %v485_v1 = vpack.c.bf16 %v461_v63, %v459_v62  ;;  %v462_v2 = vld [vmem:[%s1062_s16 + $0x78] sm:$0xff]  ;;  %v455_v4 = vld [vmem:[%s1062_s16 + $0x40] sm:$0xff] }
  0x4b   : > { %v486_v3 = vpack.c.bf16 %v462_v2, %v460_v0  ;;  %v457_v5 = vld [vmem:[%s1062_s16 + $0x50] sm:$0xff]  ;;  %v456_v6 = vld [vmem:[%s1062_s16 + $0x48] sm:$0xff]  ;;  %v458_v8 = vld [vmem:[%s1062_s16 + $0x58] sm:$0xff] }
  0x4c   : > { %700 = vmatpush.bf16.msra.mxu3 %v492_v49  ;;  %520 = vmatpush.bf16.msra.mxu1 %v492_v49  ;;  %v483_v7 = vpack.c.bf16 %v457_v5, %v455_v4  ;;  %v484_v11 = vpack.c.bf16 %v458_v8, %v456_v6  ;;  %v451_v14 = vld [vmem:[%s1062_s16 + $0x20] sm:$0xff]  ;;  %v453_v15 = vld [vmem:[%s1062_s16 + $0x30] sm:$0xff]  ;;  %v452_v16 = vld [vmem:[%s1062_s16 + $0x28] sm:$0xff] }
  0x4d   : > { %v454_v18 = vld [vmem:[%s1062_s16 + $0x38] sm:$0xff]  ;;  %v447_v19 = vld [vmem:[%s1062_s16] sm:$0xff]  ;;  %v449_v20 = vld [vmem:[%s1062_s16 + $0x10] sm:$0xff]  ;;  %v481_v22 = vpack.c.bf16 %v453_v15, %v451_v14 }
  0x4e   : > { %693 = vmatpush.bf16.msra.mxu2 %v489_v53  ;;  %503 = vmatpush.bf16.msra.mxu0 %v489_v53  ;;  %v482_v23 = vpack.c.bf16 %v454_v18, %v452_v16  ;;  %v448_v24 = vld [vmem:[%s1062_s16 + $0x8] sm:$0xff]  ;;  %v450_v25 = vld [vmem:[%s1062_s16 + $0x18] sm:$0xff]  ;;  %v479_v28 = vpack.c.bf16 %v449_v20, %v447_v19  ;;  %v782_v5 = vld [vmem:[%s1173_s1] ss:$0 sm:$0xff]  ;;  %s1124_s16 = scalar_lea.vmem [#allocation3], %s707_s15 }
  0x4f   : > { %378 = vadd.xlane.f32.xlu0 %v373_v36  ;;  %364 = vadd.xlane.f32.xlu1 %v1054_v35  ;;  %v480_v29 = vpack.c.bf16 %v450_v25, %v448_v24  ;;  %v495_v19 = vld [vmem:[%s355_s13] sm:$0x3] }
  0x50   : > { %701 = vmatpush.bf16.msra.mxu3 %v490_v55  ;;  %521 = vmatpush.bf16.msra.mxu1 %v490_v55  ;;  %v497_v20 = vperm.slane %v495_v19, 0 }
  0x51   : > { %376 = vadd.xlane.f32.xlu2 %v372_v37 }
  0x52   : > { %694 = vmatpush.bf16.msra.mxu2 %v487_v59  ;;  %504 = vmatpush.bf16.msra.mxu0 %v487_v59 }
  0x54   : > { %702 = vmatpush.bf16.msra.mxu3 %v488_v61  ;;  %522 = vmatpush.bf16.msra.mxu1 %v488_v61 }
  0x56   : > { %695 = vmatpush.bf16.msra.mxu2 %v485_v1  ;;  %505 = vmatpush.bf16.msra.mxu0 %v485_v1 }
  0x58   : > { %703 = vmatpush.bf16.msra.mxu3 %v486_v3  ;;  %523 = vmatpush.bf16.msra.mxu1 %v486_v3 }
  0x5a   : > { %696 = vmatpush.bf16.msra.mxu2 %v483_v7  ;;  %506 = vmatpush.bf16.msra.mxu0 %v483_v7 }
  0x5c   : > { %704 = vmatpush.bf16.msra.mxu3 %v484_v11  ;;  %524 = vmatpush.bf16.msra.mxu1 %v484_v11 }
  0x5e   : > { %697 = vmatpush.bf16.msra.mxu2 %v481_v22  ;;  %507 = vmatpush.bf16.msra.mxu0 %v481_v22 }
  0x60   : > { %705 = vmatpush.bf16.msra.mxu3 %v482_v23  ;;  %525 = vmatpush.bf16.msra.mxu1 %v482_v23 }
  0x62   : > { %698 = vmatpush.bf16.msra.mxu2 %v479_v28  ;;  %508 = vmatpush.bf16.msra.mxu0 %v479_v28 }
  0x64   : > { %706 = vmatpush.bf16.msra.mxu3 %v480_v29  ;;  %526 = vmatpush.bf16.msra.mxu1 %v480_v29 }
  0xba   : > { %v367_v9 = vpop.xlane.xlu0 %366  ;;  %v363_v10 = vpop.xlane.xlu1 %362 }
  0xbb   : > { %v1088_v12 = vmul.f32 0.03125, %v363_v10  ;;  %v1100_v26 = vmul.f32 0.03125, %v367_v9 }
  0xbc   : > { %v375_v13 = vpop.xlane.xlu2 %374 }
  0xbd   : > { %v383_v17 = vmul.f32 %v1088_v12, %v1088_v12  ;;  %v380_v21 = vmul.f32 0.03125, %v375_v13  ;;  %v385_v36 = vmul.f32 %v1100_v26, %v1100_v26  ;;  %v392_v1 = vsub.f32 %v1048_v33, %v1088_v12 }
  0xbe   : > { %v394_v4 = vsub.f32 %v1046_v32, %v1100_v26  ;;  %v783_v32 = vld [vmem:[%s1174_s2] ss:$0 sm:$0xff] }
  0xbf   : > { %v386_v27 = vsub.f32 %v380_v21, %v383_v17  ;;  %v498_v21 = vperm.slane %v495_v19, 1 }
  0xc1   : > { %v389_v30 = vmax.f32 %v386_v27, 0.0 }
  0xc2   : > { %v379_v31 = vpop.xlane.xlu0 %378  ;;  %v365_v34 = vpop.xlane.xlu1 %364 }
  0xc3   : > { %v382_v37 = vmul.f32 0.03125, %v379_v31  ;;  %v369_v38 = vmul.f32 0.03125, %v365_v34  ;;  %v395_v39 = vadd.f32 1e-05, %v389_v30 }
  0xc4   : > { %v377_v40 = vpop.xlane.xlu2 %376 }
  0xc5   : > { %v388_v41 = vsub.f32 %v382_v37, %v385_v36  ;;  %v384_v42 = vmul.f32 %v369_v38, %v369_v38  ;;  %v381_v43 = vmul.f32 0.03125, %v377_v40  ;;  %784 = vrsqrt.f32 %v395_v39 }
  0xc6   : > { %vm404_vm1 = vweird.f32 %v395_v39  ;;  %v393_v9 = vsub.f32 %v1054_v35, %v369_v38 }
  0xc7   : > { %v391_v44 = vmax.f32 %v388_v41, 0.0  ;;  %v387_v45 = vsub.f32 %v381_v43, %v384_v42 }
  0xc9   : > { %v397_v46 = vadd.f32 1e-05, %v391_v44  ;;  %v390_v47 = vmax.f32 %v387_v45, 0.0 }
  0xcb   : > { %786 = vrsqrt.f32 %v397_v46  ;;  %v396_v48 = vadd.f32 1e-05, %v390_v47  ;;  %v785_v49 = vpop.eup %784  ;;  %vm424_vm4 = vweird.f32 %v397_v46 }
  0xcc   : > { %v399_v50 = vmul.f32 %v785_v49, %v395_v39  ;;  %vm405_vm0 = vweird.f32 %v785_v49 }
  0xcd   : > { %788 = vrsqrt.f32 %v396_v48  ;;  %vm406_vm2 = vmor %vm404_vm1, %vm405_vm0  ;;  %vm414_vm7 = vweird.f32 %v396_v48 }
  0xce   : > { %v400_v51 = vmul.f32 %v785_v49, %v399_v50 }
  0xd0   : > { %v401_v53 = vmul.f32 0.5, %v400_v51 }
  0xd1   : > { %v787_v52 = vpop.eup %786 }
  0xd2   : > { %v419_v54 = vmul.f32 %v787_v52, %v397_v46  ;;  %v402_v56 = vsub.f32 1.5, %v401_v53  ;;  %vm425_vm3 = vweird.f32 %v787_v52 }
  0xd3   : > { %v789_v55 = vpop.eup %788  ;;  %vm426_vm6 = vmor %vm424_vm4, %vm425_vm3 }
  0xd4   : > { %v420_v57 = vmul.f32 %v787_v52, %v419_v54  ;;  %v409_v58 = vmul.f32 %v789_v55, %v396_v48  ;;  %v403_v59 = vmul.f32 %v785_v49, %v402_v56  ;;  %vm415_vm5 = vweird.f32 %v789_v55 }
  0xd5   : > { %vm416_vm8 = vmor %vm414_vm7, %vm415_vm5 }
  0xd6   : > { %v421_v60 = vmul.f32 0.5, %v420_v57  ;;  %v410_v61 = vmul.f32 %v789_v55, %v409_v58  ;;  %v407_v0 = vsel %vm406_vm2, %v785_v49, %v403_v59 }
  0xd7   : > { %v428_v6 = vmul.f32 %v407_v0, %v392_v1 }
  0xd8   : > { %v422_v62 = vsub.f32 1.5, %v421_v60  ;;  %v411_v63 = vmul.f32 0.5, %v410_v61 }
  0xd9   : > { %v435_v13 = vmul.f32 %v782_v5, %v428_v6 }
  0xda   : > { %v412_v2 = vsub.f32 1.5, %v411_v63  ;;  %v423_v3 = vmul.f32 %v787_v52, %v422_v62 }
  0xdb   : > { %v442_v17 = vadd.f32 %v783_v32, %v435_v13 }
  0xdc   : > { %v413_v7 = vmul.f32 %v789_v55, %v412_v2  ;;  %v427_v8 = vsel %vm426_vm6, %v787_v52, %v423_v3 }
  0xdd   : > { %v430_v33 = vmul.f32 %v427_v8, %v394_v4 }
  0xde   : > { %v417_v10 = vsel %vm416_vm8, %v789_v55, %v413_v7 }
  0xdf   : > { %v437_v11 = vmul.f32 %v782_v5, %v430_v33  ;;  %v429_v12 = vmul.f32 %v417_v10, %v393_v9 }
  0xe1   : > { %v444_v14 = vadd.f32 %v783_v32, %v437_v11  ;;  %v436_v15 = vmul.f32 %v782_v5, %v429_v12 }
  0xe3   : > { %v446_v16 = vpack.c.bf16 %v444_v14, %v444_v14  ;;  %v443_v18 = vadd.f32 %v783_v32, %v436_v15 }
  0xe5   : > { %514 = vmatmul.bf16.vlgmr.msra.gmra.mxu2 %v446_v16  ;;  %532 = vmatmul.bf16.vlgmr.msra.gmra.mxu3 %v446_v16  ;;  %v445_v35 = vpack.c.bf16 %v443_v18, %v442_v17 }
  0xe7   : > { %509 = vmatmul.bf16.vlgmr.msra.gmra.mxu0 %v445_v35  ;;  %527 = vmatmul.bf16.vlgmr.msra.gmra.mxu1 %v445_v35 }
 0x164   : > { %v510_v22 = vpop.f32.mrf.mxu0  ;;  %v528_v23 = vpop.f32.mrf.mxu1 }
 0x165   : > { %v511_v24 = vadd.f32 %v510_v22, %v497_v20  ;;  %v529_v25 = vadd.f32 %v528_v23, %v498_v21 }
 0x167   : > { %537 = vst [vmem:[%s1124_s16] sm:$0xff] %v511_v24 }
 0x168   : > { %538 = vst [vmem:[%s1124_s16 + $0x8] sm:$0xff] %v529_v25  ;;  %v515_v26 = vpop.f32.mrf.mxu2  ;;  %v533_v27 = vpop.f32.mrf.mxu3 }
 0x169   : > { %v516_v28 = vadd.f32 %v515_v26, %v497_v20  ;;  %v534_v29 = vadd.f32 %v533_v27, %v498_v21 }
 0x16b   : > { %541 = vst [vmem:[%s1124_s16 + $0x20] sm:$0xff] %v516_v28 }
 0x16c   : > { %542 = vst [vmem:[%s1124_s16 + $0x28] sm:$0xff] %v534_v29  ;;  %v512_v30 = vpop.f32.mrf.mxu0  ;;  %v530_v31 = vpop.f32.mrf.mxu1  ;;  %549 = sbr.rel (!%p959_p9) target bundleno = 377 (0x179), region = 67 }
 0x16d   : > { %v513_v34 = vadd.f32 %v512_v30, %v497_v20  ;;  %v531_v36 = vadd.f32 %v530_v31, %v498_v21 }
 0x16e   : > { %v568_v39 = vld [vmem:[%s1124_s16] sm:$0xff] (%p959_p9) }
 0x16f   : > { %539 = vst [vmem:[%s1124_s16 + $0x10] sm:$0xff] %v513_v34  ;;  %v570_v40 = vld [vmem:[%s1124_s16 + $0x8] sm:$0xff] (%p959_p9) }
 0x170   : > { %540 = vst [vmem:[%s1124_s16 + $0x18] sm:$0xff] %v531_v36  ;;  %v517_v37 = vpop.f32.mrf.mxu2  ;;  %v535_v38 = vpop.f32.mrf.mxu3 }
 0x171   : > { %569 = vst [vmem:[%s555_s30] sm:$0xff] %v568_v39 }
 0x172   : > { %571 = vst [vmem:[%s555_s30 + $0x8] sm:$0xff] %v570_v40  ;;  %v576_v43 = vld [vmem:[%s1124_s16 + $0x20] sm:$0xff] }
 0x173   : > { %v578_v44 = vld [vmem:[%s1124_s16 + $0x28] sm:$0xff]  ;;  %577 = vst [vmem:[%s555_s30 + $0xc0] sm:$0xff] %v576_v43 }
 0x174   : > { %579 = vst [vmem:[%s555_s30 + $0xc8] sm:$0xff] %v578_v44 }
 0x176   : > { %v572_v41 = vld [vmem:[%s1124_s16 + $0x10] sm:$0xff] }
 0x177   : > { %v574_v42 = vld [vmem:[%s1124_s16 + $0x18] sm:$0xff]  ;;  %573 = vst [vmem:[%s555_s30 + $0x60] sm:$0xff] %v572_v41 }
 0x178   : > { %575 = vst [vmem:[%s555_s30 + $0x68] sm:$0xff] %v574_v42 }
 0x179 PF: > { %s15_s26 = sadd.s32 1, %s860_s26   ;;  %s1179_s18 = smov %s832_s19 }
 0x17a   : > { %p12_p2 = scmp.ge.s32.totalorder %s15_s26, 14   ;;  %s1180_s19 = smov %s964_s12 }
 0x17b   : > { %s1181_s20 = smov %s840_s21  ;;  %s1182_s21 = smov %s953_s8 }
 0x17c   : > { %s1183_s22 = smov %s852_s24  ;;  %s1184_s23 = smov %s856_s25 }
 0x17d   : > { %s1185_s24 = smov %s1188_s28  ;;  %s1186_s25 = smov %s1192_s29 }
 0x17e   :  { %14 = sbr.rel (!%p12_p2) target bundleno = 5 (0x5), region = 127 }

// kernel: vit_forward.15
= control target key start
LH: loop header
LB: loop body
LE: loop exit
PB: predicated region body
PF: predicated region fallthrough
CT: control target
= control target key end

     0   :  { %s784_s15 = smov 0   ;;  %s786_s16 = smov 0   ;;  %s936_s0 = inlined_call_operand.vmem [shape: f32[48,512], index: 0, kind: input, shape index: {}]   ;;  %s937_s1 = inlined_call_operand.vmem [shape: f32[512,128], index: 1, kind: input, shape index: {}]   ;;  %s938_s2 = inlined_call_operand.vmem [shape: f32[1,128], index: 2, kind: input, shape index: {}]   ;;  %s939_s3 = inlined_call_operand.vmem [shape: f32[48,128], index: 3, kind: input, shape index: {}]   ;;  %s940_s4 = inlined_call_operand.vmem [shape: f32[48,128], index: 4, kind: output, shape index: {}]  }
   0x1   :  { %s788_s17 = smov 0   ;;  %s790_s18 = smov 0  }
   0x2   :  { %s792_s19 = smov 0   ;;  %s794_s20 = smov 0  }
   0x3   :  { %s796_s21 = smov 0  }
   0x4 LB: > { %s26_s22 = sadd.s32 1, %s748_s19  ;;  %s33_s23 = sadd.s32 1, %s752_s20  ;;  %s756_s21 = sphi %s796_s21, %s14_s21   ;;  %s752_s20 = sphi %s794_s20, %s946_s20   ;;  %s748_s19 = sphi %s792_s19, %s945_s19   ;;  %s744_s18 = sphi %s790_s18, %s944_s18   ;;  %s740_s17 = sphi %s788_s17, %s943_s17   ;;  %s736_s16 = sphi %s786_s16, %s942_s16   ;;  %s732_s15 = sphi %s784_s15, %s941_s15  }
   0x5   : > { %p27_p0 = scmp.ge.s32.totalorder %s26_s22, 2  ;;  %p49_p1 = scmp.ne.s32.totalorder %s736_s16, %s732_s15 }
   0x6   : > { %p50_p2 = scmp.eq.s32.totalorder %s756_s21, 0  ;;  %s42_s27 = sadd.s32 1, %s736_s16 }
   0x7   : > { %s948_s22 = smov (%p27_p0, %s26_s22), 0  ;;  %s950_s23 = smov (!%p27_p0, %s33_s23), %s752_s20 }
   0x8   : > { %p51_p3 = por %p50_p2, %p49_p1  ;;  %p35_p4 = scmp.ge.s32.totalorder %s950_s23, 2 }
   0x9   : > { %s38_s24 = ssub.s32 %s748_s19, %s948_s22  ;;  %p612_p6 = scmp.ge.s32.totalorder %s756_s21, 4 }
   0xa   : > { %s952_s23 = smov (%p35_p4, %s950_s23), 0 }
   0xb   : > { %s37_s25 = ssub.s32 %s752_s20, %s952_s23  ;;  %191 = sbr.rel (%p612_p6) target bundleno = 30 (0x1e), region = 20 }
   0xc   : > { %s39_s26 = sor.u32 %s38_s24, %s37_s25 }
   0xd   : > { %p40_p5 = scmp.eq.s32.totalorder %s39_s26, 0 }
   0xf   : > { %s835_s28 = scalar_select %p40_p5, %s736_s16, %s42_s27  }
  0x10   : > { %194 = sbr.rel (!%p51_p3) target bundleno = 30 (0x1e), region = 24  ;;  %s196_s29 = sand.u32 (%p51_p3), 1, %s736_s16  }
  0x11   : > { %s642_s30 = smul.u32 (%p51_p3), 48, %s196_s29  ;;  %s613_s5 = sshll.u32 (%p51_p3), %s748_s19, 1 }
  0x12   : > { %s625_s6 = smul.u32 (%p51_p3), 12, %s752_s20 }
  0x13   : > { %s198_s12 = scalar_lea.vmem (%p51_p3), [#allocation3], %s642_s30 }
  0x14   : > { %s202_s7 = sadd.s32 (%p51_p3), %s625_s6, %s613_s5 }
  0x15   : > { %s615_s8 = sshll.u32 %s202_s7, 3 }
  0x16   : > { %s204_s11 = scalar_lea.vmem %s936_s0, %s615_s8 }
  0x17   : > { %v217_v0 = vld [vmem:[%s204_s11] sm:$0xff]  ;;  %v219_v1 = vld [vmem:[%s204_s11 + $0x8] sm:$0xff] }
  0x18   : > { %v221_v2 = vld [vmem:[%s204_s11 + $0x20] sm:$0xff]  ;;  %218 = vst [vmem:[%s198_s12] sm:$0xff] %v217_v0  ;;  %v223_v3 = vld [vmem:[%s204_s11 + $0x28] sm:$0xff] }
  0x19   : > { %220 = vst [vmem:[%s198_s12 + $0x8] sm:$0xff] %v219_v1  ;;  %v225_v4 = vld [vmem:[%s204_s11 + $0x40] sm:$0xff]  ;;  %v227_v5 = vld [vmem:[%s204_s11 + $0x48] sm:$0xff] }
  0x1a   : > { %222 = vst [vmem:[%s198_s12 + $0x10] sm:$0xff] %v221_v2 }
  0x1b   : > { %224 = vst [vmem:[%s198_s12 + $0x18] sm:$0xff] %v223_v3 }
  0x1c   : > { %226 = vst [vmem:[%s198_s12 + $0x20] sm:$0xff] %v225_v4 }
  0x1d   : > { %228 = vst [vmem:[%s198_s12 + $0x28] sm:$0xff] %v227_v5 }
  0x1e PF: > { %p616_p7 = scmp.ge.s32.totalorder %s756_s21, 1  ;;  %p257_p8 = scmp.lt.s32.totalorder %s756_s21, 5 }
  0x20   : > { %p258_p9 = pnand %p616_p7, %p257_p8 }
  0x21   : > { %s264_s13 = sand.u32 (!%p258_p9), 1, %s732_s15   ;;  %s617_s14 = sshll.u32 (!%p258_p9), %s740_s17, 5 }
  0x22   : > { %261 = sbr.rel (%p258_p9) target bundleno = 234 (0xea), region = 55  ;;  %p314_p10 = scmp.lt.s32.totalorder (!%p258_p9), %s617_s14, 63 }
  0x23   : > { %s643_s24 = smul.u32 (!%p258_p9), 48, %s264_s13  ;;  %p621_p12 = scmp.ne.s32.totalorder (!%p258_p9), %s740_s17, 0 }
  0x24   : > { %s325_s25 = smul.u32 (!%p258_p9), 3, %s744_s18 }
  0x25   : > { %s864_s18 = scalar_lea.vmem (!%p258_p9), [#allocation3], %s643_s24 }
  0x26   : > { %p326_p11 = scmp.lt.s32.totalorder (!%p258_p9), %s325_s25, 5 }
  0x27   : > { %s954_s14 = smov (!%p314_p10, %s617_s14), 63  ;;  %346 = sbr.rel (%p621_p12) target bundleno = 48 (0x30), region = 63 }
  0x28   : > { %s618_s26 = sshll.u32 %s954_s14, 3  ;;  %s956_s25 = smov (!%p326_p11, %s325_s25), 5 }
  0x29   : > { %s852_s30 = scalar_lea.vmem %s937_s1, %s618_s26  ;;  %s619_s5 = sshll.u32 %s956_s25, 3 }
  0x2a   : > { %s857_s8 = scalar_lea.vmem %s939_s3, %s619_s5  ;;  %s862_s10 = scalar_lea.vmem %s940_s4, %s619_s5 }
  0x2c   : > { %v758_v6 = vmov 0.0  }
  0x2d   : > { %347 = vst [vmem:[#allocation2 + $0x10] sm:$0xff] %v758_v6 }
  0x2e   : > { %348 = vst [vmem:[#allocation2] sm:$0xff] %v758_v6 }
  0x2f   : > { %349 = vst [vmem:[#allocation2 + $0x8] sm:$0xff] %v758_v6 }
  0x30 PF: > { %v377_v7 = vld [vmem:[%s852_s30 + $0x70] sm:$0xff]  ;;  %v378_v8 = vld [vmem:[%s852_s30 + $0x78] sm:$0xff]  ;;  %v375_v12 = vld [vmem:[%s852_s30 + $0x60] sm:$0xff]  ;;  %p622_p13 = scmp.ne.s32.totalorder %s740_s17, 1 }
  0x31   : > { %v393_v9 = vld [vmem:[%s852_s30 + $0xf0] sm:$0xff]  ;;  %v402_v10 = vpack.c.bf16 %v378_v8, %v377_v7  ;;  %v394_v11 = vld [vmem:[%s852_s30 + $0xf8] sm:$0xff]  ;;  %v376_v13 = vld [vmem:[%s852_s30 + $0x68] sm:$0xff] }
  0x32   : > { %v410_v14 = vpack.c.bf16 %v394_v11, %v393_v9  ;;  %v391_v15 = vld [vmem:[%s852_s30 + $0xe0] sm:$0xff]  ;;  %v392_v16 = vld [vmem:[%s852_s30 + $0xe8] sm:$0xff]  ;;  %v401_v17 = vpack.c.bf16 %v376_v13, %v375_v12  ;;  %v373_v19 = vld [vmem:[%s852_s30 + $0x50] sm:$0xff] }
  0x33   : > { %411 = vmatpush.bf16.msra.mxu0 %v402_v10  ;;  %626 = vmatpush.bf16.msra.mxu2 %v402_v10  ;;  %v409_v18 = vpack.c.bf16 %v392_v16, %v391_v15  ;;  %v374_v20 = vld [vmem:[%s852_s30 + $0x58] sm:$0xff]  ;;  %v389_v21 = vld [vmem:[%s852_s30 + $0xd0] sm:$0xff]  ;;  %v371_v25 = vld [vmem:[%s852_s30 + $0x40] sm:$0xff] }
  0x34   : > { %429 = vmatpush.bf16.msra.mxu1 %v410_v14  ;;  %634 = vmatpush.bf16.msra.mxu3 %v410_v14  ;;  %v390_v22 = vld [vmem:[%s852_s30 + $0xd8] sm:$0xff]  ;;  %v400_v23 = vpack.c.bf16 %v374_v20, %v373_v19  ;;  %v372_v26 = vld [vmem:[%s852_s30 + $0x48] sm:$0xff]  ;;  %v387_v27 = vld [vmem:[%s852_s30 + $0xc0] sm:$0xff] }
  0x35   : > { %v408_v24 = vpack.c.bf16 %v390_v22, %v389_v21  ;;  %v388_v28 = vld [vmem:[%s852_s30 + $0xc8] sm:$0xff]  ;;  %v399_v29 = vpack.c.bf16 %v372_v26, %v371_v25  ;;  %v369_v31 = vld [vmem:[%s852_s30 + $0x30] sm:$0xff]  ;;  %v370_v32 = vld [vmem:[%s852_s30 + $0x38] sm:$0xff] }
  0x36   : > { %v407_v30 = vpack.c.bf16 %v388_v28, %v387_v27  ;;  %v385_v33 = vld [vmem:[%s852_s30 + $0xb0] sm:$0xff]  ;;  %v386_v34 = vld [vmem:[%s852_s30 + $0xb8] sm:$0xff]  ;;  %v398_v35 = vpack.c.bf16 %v370_v32, %v369_v31  ;;  %v367_v37 = vld [vmem:[%s852_s30 + $0x20] sm:$0xff] }
  0x37   : > { %412 = vmatpush.bf16.msra.mxu0 %v401_v17  ;;  %627 = vmatpush.bf16.msra.mxu2 %v401_v17  ;;  %v406_v36 = vpack.c.bf16 %v386_v34, %v385_v33  ;;  %v368_v38 = vld [vmem:[%s852_s30 + $0x28] sm:$0xff]  ;;  %v383_v39 = vld [vmem:[%s852_s30 + $0xa0] sm:$0xff]  ;;  %v365_v43 = vld [vmem:[%s852_s30 + $0x10] sm:$0xff] }
  0x38   : > { %430 = vmatpush.bf16.msra.mxu1 %v409_v18  ;;  %635 = vmatpush.bf16.msra.mxu3 %v409_v18  ;;  %v384_v40 = vld [vmem:[%s852_s30 + $0xa8] sm:$0xff]  ;;  %v397_v41 = vpack.c.bf16 %v368_v38, %v367_v37  ;;  %v366_v44 = vld [vmem:[%s852_s30 + $0x18] sm:$0xff]  ;;  %v381_v45 = vld [vmem:[%s852_s30 + $0x90] sm:$0xff] }
  0x39   : > { %v405_v42 = vpack.c.bf16 %v384_v40, %v383_v39  ;;  %v382_v46 = vld [vmem:[%s852_s30 + $0x98] sm:$0xff]  ;;  %v396_v47 = vpack.c.bf16 %v366_v44, %v365_v43  ;;  %v363_v49 = vld [vmem:[%s852_s30] sm:$0xff]  ;;  %v364_v50 = vld [vmem:[%s852_s30 + $0x8] sm:$0xff] }
  0x3a   : > { %v404_v48 = vpack.c.bf16 %v382_v46, %v381_v45  ;;  %v379_v51 = vld [vmem:[%s852_s30 + $0x80] sm:$0xff]  ;;  %v380_v52 = vld [vmem:[%s852_s30 + $0x88] sm:$0xff]  ;;  %v395_v53 = vpack.c.bf16 %v364_v50, %v363_v49  ;;  %v350_v2 = vld [vmem:[#allocation2 + $0x10] sm:$0xff] }
  0x3b   : > { %413 = vmatpush.bf16.msra.mxu0 %v400_v23  ;;  %628 = vmatpush.bf16.msra.mxu2 %v400_v23  ;;  %v353_v54 = vld [vmem:[%s864_s18] sm:$0xff]  ;;  %v355_v55 = vld [vmem:[%s864_s18 + $0x10] sm:$0xff]  ;;  %v403_v57 = vpack.c.bf16 %v380_v52, %v379_v51  ;;  %v354_v58 = vld [vmem:[%s864_s18 + $0x8] sm:$0xff] }
  0x3c   : > { %431 = vmatpush.bf16.msra.mxu1 %v408_v24  ;;  %636 = vmatpush.bf16.msra.mxu3 %v408_v24  ;;  %v357_v56 = vld [vmem:[%s864_s18 + $0x20] sm:$0xff]  ;;  %v356_v59 = vld [vmem:[%s864_s18 + $0x18] sm:$0xff]  ;;  %v358_v60 = vld [vmem:[%s864_s18 + $0x28] sm:$0xff]  ;;  %v359_v61 = vpack.c.bf16 %v355_v55, %v353_v54 }
  0x3d   : > { %v361_v62 = vpack.c.bf16 %v357_v56, %v357_v56  ;;  %v360_v63 = vpack.c.bf16 %v356_v59, %v354_v58  ;;  %v362_v0 = vpack.c.bf16 %v358_v60, %v358_v60  ;;  %v352_v7 = vld [vmem:[#allocation2 + $0x8] sm:$0xff]  ;;  %v351_v11 = vld [vmem:[#allocation2] sm:$0xff] }
  0x3f   : > { %414 = vmatpush.bf16.msra.mxu0 %v399_v29  ;;  %629 = vmatpush.bf16.msra.mxu2 %v399_v29 }
  0x40   : > { %432 = vmatpush.bf16.msra.mxu1 %v407_v30  ;;  %637 = vmatpush.bf16.msra.mxu3 %v407_v30 }
  0x43   : > { %415 = vmatpush.bf16.msra.mxu0 %v398_v35  ;;  %630 = vmatpush.bf16.msra.mxu2 %v398_v35 }
  0x44   : > { %433 = vmatpush.bf16.msra.mxu1 %v406_v36  ;;  %638 = vmatpush.bf16.msra.mxu3 %v406_v36 }
  0x47   : > { %416 = vmatpush.bf16.msra.mxu0 %v397_v41  ;;  %631 = vmatpush.bf16.msra.mxu2 %v397_v41 }
  0x48   : > { %434 = vmatpush.bf16.msra.mxu1 %v405_v42  ;;  %639 = vmatpush.bf16.msra.mxu3 %v405_v42 }
  0x4b   : > { %417 = vmatpush.bf16.msra.mxu0 %v396_v47  ;;  %632 = vmatpush.bf16.msra.mxu2 %v396_v47 }
  0x4c   : > { %435 = vmatpush.bf16.msra.mxu1 %v404_v48  ;;  %640 = vmatpush.bf16.msra.mxu3 %v404_v48 }
  0x4f   : > { %418 = vmatpush.bf16.msra.mxu0 %v395_v53  ;;  %633 = vmatpush.bf16.msra.mxu2 %v395_v53 }
  0x50   : > { %436 = vmatpush.bf16.msra.mxu1 %v403_v57  ;;  %641 = vmatpush.bf16.msra.mxu3 %v403_v57 }
  0x52   : > { %419 = vmatmul.bf16.vlgmr.msra.gmra.mxu0 %v359_v61  ;;  %424 = vmatmul.bf16.vlgmr.msra.gmra.mxu2 %v361_v62 }
  0x53   : > { %437 = vmatmul.bf16.vlgmr.msra.gmra.mxu1 %v360_v63  ;;  %442 = vmatmul.bf16.vlgmr.msra.gmra.mxu3 %v362_v0 }
  0xcf   : > { %v420_v1 = vpop.f32.mrf.mxu0 }
  0xd0   : > { %v438_v3 = vpop.f32.mrf.mxu1 }
  0xd1   : > { %v439_v4 = vadd.f32 %v438_v3, %v420_v1 }
  0xd3   : > { %v447_v5 = vadd.f32 %v439_v4, %v350_v2 }
  0xd5   : > { %450 = vst [vmem:[#allocation2 + $0x10] sm:$0xff] %v447_v5  ;;  %v425_v6 = vpop.f32.mrf.mxu2 }
  0xd6   : > { %v443_v8 = vpop.f32.mrf.mxu3 }
  0xd7   : > { %v444_v9 = vadd.f32 %v443_v8, %v425_v6  ;;  %v422_v10 = vpop.f32.mrf.mxu0 }
  0xd8   : > { %v440_v12 = vpop.f32.mrf.mxu1 }
  0xd9   : > { %v449_v13 = vadd.f32 %v444_v9, %v352_v7  ;;  %v441_v14 = vadd.f32 %v440_v12, %v422_v10 }
  0xda   : > { %456 = sbr.rel (%p622_p13) target bundleno = 234 (0xea), region = 67 }
  0xdb   : > { %452 = vst [vmem:[#allocation2 + $0x8] sm:$0xff] %v449_v13  ;;  %v448_v15 = vadd.f32 %v441_v14, %v351_v11 }
  0xdd   : > { %451 = vst [vmem:[#allocation2] sm:$0xff] %v448_v15  ;;  %v427_v16 = vpop.f32.mrf.mxu2 }
  0xde   : > { %v445_v17 = vpop.f32.mrf.mxu3 }
  0xdf   : > { %v457_v18 = vld [vmem:[#allocation2 + $0x10] sm:$0xff]  ;;  %v701_v19 = vld [vmem:[%s938_s2] ss:$0 sm:$0xff]  ;;  %v468_v22 = vld [vmem:[%s857_s8 + $0x8] sm:$0xff] }
  0xe0   : > { %v467_v20 = vld [vmem:[%s857_s8] sm:$0xff]  ;;  %v464_v23 = vadd.f32 %v701_v19, %v457_v18  ;;  %v469_v26 = vld [vmem:[%s857_s8 + $0x10] sm:$0xff] }
  0xe2   : > { %v459_v25 = vld [vmem:[#allocation2 + $0x8] sm:$0xff]  ;;  %v470_v28 = vadd.f32 %v467_v20, %v464_v23 }
  0xe3   : > { %v466_v27 = vadd.f32 %v701_v19, %v459_v25 }
  0xe4   : > { %v458_v21 = vld [vmem:[#allocation2] sm:$0xff]  ;;  %473 = vst [vmem:[%s862_s10] sm:$0xff] %v470_v28 }
  0xe5   : > { %v465_v24 = vadd.f32 %v701_v19, %v458_v21  ;;  %v472_v30 = vadd.f32 %v469_v26, %v466_v27 }
  0xe7   : > { %v471_v29 = vadd.f32 %v468_v22, %v465_v24  ;;  %475 = vst [vmem:[%s862_s10 + $0x10] sm:$0xff] %v472_v30 }
  0xe9   : > { %474 = vst [vmem:[%s862_s10 + $0x8] sm:$0xff] %v471_v29 }
  0xea PF: > { %s14_s21 = sadd.s32 1, %s756_s21   ;;  %s941_s15 = smov %s736_s16 }
  0xeb   : > { %p11_p0 = scmp.ge.s32.totalorder %s14_s21, 6   ;;  %s942_s16 = smov %s835_s28 }
  0xec   : > { %s943_s17 = smov %s748_s19  ;;  %s944_s18 = smov %s752_s20 }
  0xed   : > { %s945_s19 = smov %s948_s22  ;;  %s946_s20 = smov %s952_s23 }
  0xee   :  { %13 = sbr.rel (!%p11_p0) target bundleno = 4 (0x4), region = 111 }

// kernel: vit_forward.16
= control target key start
LH: loop header
LB: loop body
LE: loop exit
PB: predicated region body
PF: predicated region fallthrough
CT: control target
= control target key end

     0   :  { %s765_s18 = smov 0   ;;  %s767_s19 = smov 0   ;;  %s947_s0 = inlined_call_operand.vmem [shape: f32[48,128], index: 0, kind: input, shape index: {}]   ;;  %s948_s1 = inlined_call_operand.vmem [shape: f32[1,128], index: 1, kind: input, shape index: {}]   ;;  %s949_s2 = inlined_call_operand.vmem [shape: f32[1,128], index: 2, kind: input, shape index: {}]   ;;  %s950_s3 = inlined_call_operand.vmem [shape: f32[128,128], index: 3, kind: input, shape index: {}]   ;;  %s951_s4 = inlined_call_operand.vmem [shape: f32[1,128], index: 4, kind: input, shape index: {}]   ;;  %s952_s5 = inlined_call_operand.vmem [shape: f32[48,128], index: 5, kind: output, shape index: {}]  }
   0x1   :  { %s769_s20 = smov 0  }
   0x2 LB: > { %s27_s21 = sadd.s32 1, %s729_s19  ;;  %p656_p0 = scmp.ge.s32.totalorder %s733_s20, 1  ;;  %s733_s20 = sphi %s769_s20, %s15_s20   ;;  %s729_s19 = sphi %s767_s19, %s956_s19   ;;  %s725_s18 = sphi %s765_s18, %s955_s18  }
   0x3   : > { %p29_p1 = scmp.ge.s32.totalorder %s27_s21, 2  ;;  %p219_p2 = scmp.lt.s32.totalorder %s733_s20, 3 }
   0x5   : > { %s958_s21 = smov (%p29_p1, %s27_s21), 0  ;;  %p220_p3 = pnand %p656_p0, %p219_p2 }
   0x6   : > { %s257_s22 = smul.u32 (!%p220_p3), 3, %s725_s18 }
   0x7   : > { %223 = sbr.rel (%p220_p3) target bundleno = 364 (0x16c), region = 40 }
   0x8   : > { %p258_p4 = scmp.lt.s32.totalorder (!%p220_p3), %s257_s22, 5 }
   0xc   : > { %s960_s22 = smov (!%p258_p4, %s257_s22), 5  ;;  %v381_v6 = vld [vmem:[%s950_s3 + $0x70] sm:$0xff]  ;;  %v382_v7 = vld [vmem:[%s950_s3 + $0x78] sm:$0xff]  ;;  %v379_v9 = vld [vmem:[%s950_s3 + $0x60] sm:$0xff] }
   0xd   : > { %s657_s23 = sshll.u32 %s960_s22, 3  ;;  %v390_v8 = vpack.c.bf16 %v382_v7, %v381_v6  ;;  %v380_v10 = vld [vmem:[%s950_s3 + $0x68] sm:$0xff]  ;;  %v377_v12 = vld [vmem:[%s950_s3 + $0x50] sm:$0xff]  ;;  %v378_v13 = vld [vmem:[%s950_s3 + $0x58] sm:$0xff] }
   0xe   : > { %s261_s26 = scalar_lea.vmem %s947_s0, %s657_s23  ;;  %v389_v11 = vpack.c.bf16 %v380_v10, %v379_v9  ;;  %v388_v14 = vpack.c.bf16 %v378_v13, %v377_v12  ;;  %v375_v15 = vld [vmem:[%s950_s3 + $0x40] sm:$0xff]  ;;  %v376_v16 = vld [vmem:[%s950_s3 + $0x48] sm:$0xff]  ;;  %v373_v18 = vld [vmem:[%s950_s3 + $0x30] sm:$0xff]  ;;  %s277_s27 = scalar_lea.vmem %s952_s5, %s657_s23 }
   0xf   : > { %v791_v0 = vld [vmem:[%s261_s26 + $0x10] sm:$0xff]  ;;  %v793_v1 = vld [vmem:[%s261_s26] sm:$0xff]  ;;  %v799_v3 = vld [vmem:[%s261_s26 + $0x8] sm:$0xff]  ;;  %664 = vmatpush.bf16.msra.mxu1 %v390_v8  ;;  %395 = vmatpush.bf16.msra.mxu0 %v390_v8  ;;  %v387_v17 = vpack.c.bf16 %v376_v16, %v375_v15 }
  0x10   : > { %286 = vadd.xlane.f32.xlu2 %v791_v0  ;;  %282 = vadd.xlane.f32.xlu0 %v793_v1  ;;  %v291_v2 = vmul.f32 %v793_v1, %v793_v1  ;;  %v293_v4 = vmul.f32 %v791_v0, %v791_v0  ;;  %v292_v5 = vmul.f32 %v799_v3, %v799_v3  ;;  %v374_v19 = vld [vmem:[%s950_s3 + $0x38] sm:$0xff]  ;;  %v371_v21 = vld [vmem:[%s950_s3 + $0x20] sm:$0xff]  ;;  %v372_v22 = vld [vmem:[%s950_s3 + $0x28] sm:$0xff] }
  0x11   : > { %v386_v20 = vpack.c.bf16 %v374_v19, %v373_v18  ;;  %v385_v23 = vpack.c.bf16 %v372_v22, %v371_v21  ;;  %v369_v28 = vld [vmem:[%s950_s3 + $0x10] sm:$0xff]  ;;  %v370_v29 = vld [vmem:[%s950_s3 + $0x18] sm:$0xff]  ;;  %v367_v32 = vld [vmem:[%s950_s3] sm:$0xff] }
  0x12   : > { %294 = vadd.xlane.f32.xlu1 %v291_v2  ;;  %v368_v33 = vld [vmem:[%s950_s3 + $0x8] sm:$0xff]  ;;  %v384_v35 = vpack.c.bf16 %v370_v29, %v369_v28  ;;  %v696_v13 = vld [vmem:[%s948_s1] ss:$0 sm:$0xff] }
  0x13   : > { %665 = vmatpush.bf16.msra.mxu1 %v389_v11  ;;  %396 = vmatpush.bf16.msra.mxu0 %v389_v11  ;;  %v383_v37 = vpack.c.bf16 %v368_v33, %v367_v32 }
  0x17   : > { %666 = vmatpush.bf16.msra.mxu1 %v388_v14  ;;  %397 = vmatpush.bf16.msra.mxu0 %v388_v14 }
  0x18   : > { %298 = vadd.xlane.f32.xlu2 %v293_v4  ;;  %284 = vadd.xlane.f32.xlu0 %v799_v3 }
  0x1a   : > { %296 = vadd.xlane.f32.xlu1 %v292_v5 }
  0x1b   : > { %667 = vmatpush.bf16.msra.mxu1 %v387_v17  ;;  %398 = vmatpush.bf16.msra.mxu0 %v387_v17 }
  0x1f   : > { %668 = vmatpush.bf16.msra.mxu1 %v386_v20  ;;  %399 = vmatpush.bf16.msra.mxu0 %v386_v20  ;;  %v697_v20 = vld [vmem:[%s949_s2] ss:$0 sm:$0xff] }
  0x23   : > { %669 = vmatpush.bf16.msra.mxu1 %v385_v23  ;;  %400 = vmatpush.bf16.msra.mxu0 %v385_v23 }
  0x27   : > { %670 = vmatpush.bf16.msra.mxu1 %v384_v35  ;;  %401 = vmatpush.bf16.msra.mxu0 %v384_v35 }
  0x2b   : > { %671 = vmatpush.bf16.msra.mxu1 %v383_v37  ;;  %402 = vmatpush.bf16.msra.mxu0 %v383_v37 }
  0x83   : > { %v287_v24 = vpop.xlane.xlu2 %286  ;;  %v283_v25 = vpop.xlane.xlu0 %282 }
  0x84   : > { %v842_v26 = vmul.f32 0.03125, %v283_v25  ;;  %v850_v30 = vmul.f32 0.03125, %v287_v24 }
  0x85   : > { %v295_v27 = vpop.xlane.xlu1 %294 }
  0x86   : > { %v303_v31 = vmul.f32 %v842_v26, %v842_v26  ;;  %v300_v34 = vmul.f32 0.03125, %v295_v27  ;;  %v305_v38 = vmul.f32 %v850_v30, %v850_v30  ;;  %v312_v9 = vsub.f32 %v793_v1, %v842_v26 }
  0x87   : > { %v314_v12 = vsub.f32 %v791_v0, %v850_v30 }
  0x88   : > { %v306_v36 = vsub.f32 %v300_v34, %v303_v31 }
  0x8a   : > { %v309_v39 = vmax.f32 %v306_v36, 0.0 }
  0x8b   : > { %v299_v40 = vpop.xlane.xlu2 %298  ;;  %v285_v41 = vpop.xlane.xlu0 %284 }
  0x8c   : > { %v302_v42 = vmul.f32 0.03125, %v299_v40  ;;  %v289_v43 = vmul.f32 0.03125, %v285_v41  ;;  %v315_v44 = vadd.f32 1e-05, %v309_v39 }
  0x8d   : > { %v297_v45 = vpop.xlane.xlu1 %296 }
  0x8e   : > { %v308_v46 = vsub.f32 %v302_v42, %v305_v38  ;;  %v304_v47 = vmul.f32 %v289_v43, %v289_v43  ;;  %v301_v48 = vmul.f32 0.03125, %v297_v45  ;;  %699 = vrsqrt.f32 %v315_v44 }
  0x8f   : > { %vm324_vm1 = vweird.f32 %v315_v44  ;;  %v313_v17 = vsub.f32 %v799_v3, %v289_v43  ;;  %v698_v3 = vld [vmem:[%s951_s4] ss:$0 sm:$0xff] }
  0x90   : > { %v311_v49 = vmax.f32 %v308_v46, 0.0  ;;  %v307_v50 = vsub.f32 %v301_v48, %v304_v47 }
  0x92   : > { %v317_v51 = vadd.f32 1e-05, %v311_v49  ;;  %v310_v52 = vmax.f32 %v307_v50, 0.0 }
  0x94   : > { %701 = vrsqrt.f32 %v317_v51  ;;  %v316_v53 = vadd.f32 1e-05, %v310_v52  ;;  %v700_v54 = vpop.eup %699  ;;  %vm344_vm4 = vweird.f32 %v317_v51 }
  0x95   : > { %v319_v55 = vmul.f32 %v700_v54, %v315_v44  ;;  %vm325_vm0 = vweird.f32 %v700_v54 }
  0x96   : > { %703 = vrsqrt.f32 %v316_v53  ;;  %vm326_vm2 = vmor %vm324_vm1, %vm325_vm0  ;;  %vm334_vm7 = vweird.f32 %v316_v53 }
  0x97   : > { %v320_v56 = vmul.f32 %v700_v54, %v319_v55 }
  0x99   : > { %v321_v58 = vmul.f32 0.5, %v320_v56 }
  0x9a   : > { %v702_v57 = vpop.eup %701 }
  0x9b   : > { %v339_v59 = vmul.f32 %v702_v57, %v317_v51  ;;  %v322_v61 = vsub.f32 1.5, %v321_v58  ;;  %vm345_vm3 = vweird.f32 %v702_v57 }
  0x9c   : > { %v704_v60 = vpop.eup %703  ;;  %vm346_vm6 = vmor %vm344_vm4, %vm345_vm3 }
  0x9d   : > { %v340_v62 = vmul.f32 %v702_v57, %v339_v59  ;;  %v329_v63 = vmul.f32 %v704_v60, %v316_v53  ;;  %v323_v2 = vmul.f32 %v700_v54, %v322_v61  ;;  %vm335_vm5 = vweird.f32 %v704_v60 }
  0x9e   : > { %vm336_vm8 = vmor %vm334_vm7, %vm335_vm5 }
  0x9f   : > { %v341_v4 = vmul.f32 0.5, %v340_v62  ;;  %v330_v5 = vmul.f32 %v704_v60, %v329_v63  ;;  %v327_v8 = vsel %vm326_vm2, %v700_v54, %v323_v2 }
  0xa0   : > { %v348_v14 = vmul.f32 %v327_v8, %v312_v9 }
  0xa1   : > { %v342_v6 = vsub.f32 1.5, %v341_v4  ;;  %v331_v7 = vmul.f32 0.5, %v330_v5 }
  0xa2   : > { %v355_v21 = vmul.f32 %v696_v13, %v348_v14 }
  0xa3   : > { %v332_v10 = vsub.f32 1.5, %v331_v7  ;;  %v343_v11 = vmul.f32 %v702_v57, %v342_v6 }
  0xa4   : > { %v362_v25 = vadd.f32 %v697_v20, %v355_v21 }
  0xa5   : > { %v333_v15 = vmul.f32 %v704_v60, %v332_v10  ;;  %v347_v16 = vsel %vm346_vm6, %v702_v57, %v343_v11 }
  0xa6   : > { %v350_v1 = vmul.f32 %v347_v16, %v314_v12 }
  0xa7   : > { %v337_v18 = vsel %vm336_vm8, %v704_v60, %v333_v15 }
  0xa8   : > { %v357_v19 = vmul.f32 %v696_v13, %v350_v1  ;;  %v349_v0 = vmul.f32 %v337_v18, %v313_v17 }
  0xaa   : > { %v364_v22 = vadd.f32 %v697_v20, %v357_v19  ;;  %v356_v23 = vmul.f32 %v696_v13, %v349_v0 }
  0xac   : > { %v366_v24 = vpack.c.bf16 %v364_v22, %v364_v22  ;;  %v363_v26 = vadd.f32 %v697_v20, %v356_v23 }
  0xae   : > { %408 = vmatmul.bf16.vlgmr.msra.gmra.mxu1 %v366_v24  ;;  %v365_v27 = vpack.c.bf16 %v363_v26, %v362_v25 }
  0xb0   : > { %403 = vmatmul.bf16.vlgmr.msra.gmra.mxu0 %v365_v27 }
 0x12b   : > { %v409_v28 = vpop.f32.mrf.mxu1 }
 0x12c   : > { %v876_v29 = vadd.f32 %v698_v3, %v409_v28 }
 0x12d   : > { %v404_v30 = vpop.f32.mrf.mxu0 }
 0x12e   : > { %v879_v31 = vmul.f32 0.70710677, %v876_v29  ;;  %v881_v32 = vadd.f32 %v698_v3, %v404_v30 }
 0x130   : > { %v499_v33 = vmul.f32 %v879_v31, %v879_v31  ;;  %v886_v34 = vmul.f32 0.70710677, %v881_v32 }
 0x132   : > { %v888_v35 = vmin.f32 %v499_v33, 16.0  ;;  %v419_v36 = vmul.f32 %v886_v34, %v886_v34 }
 0x133   : > { %v411_v37 = vpop.f32.mrf.mxu1 }
 0x134   : > { %v501_v38 = vmul.f32 2.1237322e-06, %v888_v35  ;;  %v512_v39 = vmul.f32 3.8918573e-05, %v888_v35  ;;  %v420_v40 = vmin.f32 %v419_v36, 16.0 }
 0x135   : > { %v406_v41 = vpop.f32.mrf.mxu0 }
 0x136   : > { %v513_v42 = vadd.f32 0.001143296, %v512_v39  ;;  %v421_v43 = vmul.f32 2.1237322e-06, %v420_v40  ;;  %v894_v44 = vadd.f32 %v698_v3, %v406_v41  ;;  %v432_v45 = vmul.f32 3.8918573e-05, %v420_v40 }
 0x137   : > { %v502_v46 = vadd.f32 0.00028619796, %v501_v38 }
 0x138   : > { %v514_v47 = vmul.f32 %v513_v42, %v888_v35  ;;  %v422_v48 = vadd.f32 0.00028619796, %v421_v43  ;;  %v433_v49 = vadd.f32 0.001143296, %v432_v45  ;;  %v898_v50 = vmul.f32 0.70710677, %v894_v44 }
 0x139   : > { %v503_v55 = vmul.f32 %v502_v46, %v888_v35 }
 0x13a   : > { %v515_v51 = vadd.f32 0.014752088, %v514_v47  ;;  %v423_v52 = vmul.f32 %v422_v48, %v420_v40  ;;  %v434_v53 = vmul.f32 %v433_v49, %v420_v40  ;;  %v459_v54 = vmul.f32 %v898_v50, %v898_v50 }
 0x13b   : > { %v504_v2 = vadd.f32 0.0036580483, %v503_v55 }
 0x13c   : > { %v516_v56 = vmul.f32 %v515_v51, %v888_v35  ;;  %v424_v57 = vadd.f32 0.0036580483, %v423_v52  ;;  %v435_v58 = vadd.f32 0.014752088, %v434_v53  ;;  %v904_v59 = vmin.f32 %v459_v54, 16.0 }
 0x13d   : > { %v505_v14 = vmul.f32 %v504_v2, %v888_v35 }
 0x13e   : > { %v517_v60 = vadd.f32 0.112945676, %v516_v56  ;;  %v436_v61 = vmul.f32 %v435_v58, %v420_v40  ;;  %v461_v62 = vmul.f32 2.1237322e-06, %v904_v59  ;;  %v472_v63 = vmul.f32 3.8918573e-05, %v904_v59 }
 0x13f   : > { %v425_v5 = vmul.f32 %v424_v57, %v420_v40  ;;  %v506_v0 = vadd.f32 0.05243302, %v505_v14 }
 0x140   : > { %v518_v4 = vmul.f32 %v517_v60, %v888_v35  ;;  %v437_v6 = vadd.f32 0.112945676, %v436_v61  ;;  %v462_v7 = vadd.f32 0.00028619796, %v461_v62  ;;  %v473_v8 = vadd.f32 0.001143296, %v472_v63 }
 0x141   : > { %v426_v15 = vadd.f32 0.05243302, %v425_v5  ;;  %v507_v26 = vmul.f32 %v506_v0, %v888_v35 }
 0x142   : > { %v519_v9 = vadd.f32 0.4994258, %v518_v4  ;;  %v438_v10 = vmul.f32 %v437_v6, %v420_v40  ;;  %v463_v11 = vmul.f32 %v462_v7, %v904_v59  ;;  %v474_v12 = vmul.f32 %v473_v8, %v904_v59 }
 0x143   : > { %v427_v21 = vmul.f32 %v426_v15, %v420_v40  ;;  %v508_v38 = vadd.f32 0.18741608, %v507_v26  ;;  %v415_v26 = vmul.f32 0.5, %v876_v29 }
 0x144   : > { %v520_v13 = vmul.f32 %v519_v9, %v888_v35  ;;  %v439_v16 = vadd.f32 0.4994258, %v438_v10  ;;  %v475_v17 = vadd.f32 0.014752088, %v474_v12  ;;  %v464_v19 = vadd.f32 0.0036580483, %v463_v11 }
 0x145   : > { %v428_v27 = vadd.f32 0.18741608, %v427_v21  ;;  %v509_v48 = vmul.f32 %v508_v38, %v888_v35 }
 0x146   : > { %v521_v1 = vadd.f32 1.0, %v520_v13  ;;  %v440_v18 = vmul.f32 %v439_v16, %v420_v40  ;;  %v476_v20 = vmul.f32 %v475_v17, %v904_v59  ;;  %v465_v24 = vmul.f32 %v464_v19, %v904_v59 }
 0x147   : > { %v429_v41 = vmul.f32 %v428_v27, %v420_v40  ;;  %v510_v60 = vadd.f32 1.1283791, %v509_v48  ;;  %v413_v17 = vmul.f32 0.5, %v881_v32 }
 0x148   : > { %705 = vrcp.f32 %v521_v1  ;;  %v441_v22 = vadd.f32 1.0, %v440_v18  ;;  %v477_v23 = vadd.f32 0.112945676, %v476_v20  ;;  %v466_v33 = vadd.f32 0.05243302, %v465_v24 }
 0x149   : > { %v430_v49 = vadd.f32 1.1283791, %v429_v41  ;;  %vm527_vm11 = vweird.f32 %v521_v1  ;;  %v533_v55 = vand.u32 2147483648, %v521_v1  ;;  %v531_v57 = vand.u32 2147483647, %v521_v1 }
 0x14a   : > { %707 = vrcp.f32 %v441_v22  ;;  %v478_v25 = vmul.f32 %v477_v23, %v904_v59  ;;  %v467_v46 = vmul.f32 %v466_v33, %v904_v59  ;;  %v453_v51 = vand.u32 2147483648, %v441_v22 }
 0x14b   : > { %v451_v54 = vand.u32 2147483647, %v441_v22  ;;  %vm447_vm13 = vweird.f32 %v441_v22  ;;  %v431_v63 = vmul.f32 %v430_v49, %v886_v34  ;;  %v534_v4 = vor.u32 1.1754944e-38, %v533_v55 }
 0x14c   : > { %v479_v28 = vadd.f32 0.4994258, %v478_v25  ;;  %v468_v56 = vadd.f32 0.18741608, %v467_v46  ;;  %v454_v35 = vor.u32 1.1754944e-38, %v453_v51  ;;  %vm532_vm0 = vcmp.eq.f32.partialorder %v531_v57, 8.507059e+37 }
 0x14d   : > { %vm452_vm15 = vcmp.eq.f32.partialorder %v451_v54, 8.507059e+37  ;;  %v511_v11 = vmul.f32 %v510_v60, %v879_v31  ;;  %v414_v24 = vmul.f32 0.5, %v894_v44 }
 0x14e   : > { %v706_v3 = vpop.eup %705  ;;  %v480_v36 = vmul.f32 %v479_v28, %v904_v59  ;;  %v469_v6 = vmul.f32 %v468_v56, %v904_v59 }
 0x14f   : > { %v523_v30 = vmul.f32 %v706_v3, %v521_v1  ;;  %vm528_vm9 = vweird.f32 %v706_v3 }
 0x150   : > { %v708_v37 = vpop.eup %707  ;;  %v481_v43 = vadd.f32 1.0, %v480_v36  ;;  %vm920_vm12 = vmor %vm527_vm11, %vm528_vm9  ;;  %v470_v14 = vadd.f32 1.1283791, %v469_v6 }
 0x151   : > { %v524_v39 = vsub.f32 1.0, %v523_v30  ;;  %v443_v42 = vmul.f32 %v708_v37, %v441_v22  ;;  %vm448_vm10 = vweird.f32 %v708_v37 }
 0x152   : > { %709 = vrcp.f32 %v481_v43  ;;  %vm449_vm14 = vmor %vm447_vm13, %vm448_vm10  ;;  %v493_v13 = vand.u32 2147483648, %v481_v43  ;;  %v491_v34 = vand.u32 2147483647, %v481_v43  ;;  %vm487_vm2 = vweird.f32 %v481_v43 }
 0x153   : > { %v525_v45 = vmul.f32 %v706_v3, %v524_v39  ;;  %v444_v47 = vsub.f32 1.0, %v443_v42  ;;  %v471_v19 = vmul.f32 %v470_v14, %v898_v50 }
 0x154   : > { %v494_v31 = vor.u32 1.1754944e-38, %v493_v13  ;;  %vm492_vm4 = vcmp.eq.f32.partialorder %v491_v34, 8.507059e+37 }
 0x155   : > { %v526_v52 = vadd.f32 %v706_v3, %v525_v45  ;;  %v445_v53 = vmul.f32 %v708_v37, %v444_v47 }
 0x157   : > { %v446_v58 = vadd.f32 %v708_v37, %v445_v53  ;;  %v530_v62 = vsel %vm920_vm12, %v706_v3, %v526_v52 }
 0x158   : > { %v710_v61 = vpop.eup %709  ;;  %v535_v9 = vsel %vm532_vm0, %v534_v4, %v530_v62 }
 0x159   : > { %v450_v2 = vsel %vm449_vm14, %v708_v37, %v446_v58  ;;  %v483_v7 = vmul.f32 %v710_v61, %v481_v43  ;;  %vm488_vm1 = vweird.f32 %v710_v61  ;;  %v536_v16 = vmul.f32 %v535_v9, %v511_v11 }
 0x15a   : > { %v455_v5 = vsel %vm452_vm15, %v454_v35, %v450_v2  ;;  %vm489_vm3 = vmor %vm487_vm2, %vm488_vm1 }
 0x15b   : > { %v456_v8 = vmul.f32 %v455_v5, %v431_v63  ;;  %v484_v10 = vsub.f32 1.0, %v483_v7  ;;  %v661_v0 = vclamps-f32 %v536_v16, 1.0 }
 0x15d   : > { %v659_v12 = vclamps-f32 %v456_v8, 1.0  ;;  %v485_v15 = vmul.f32 %v710_v61, %v484_v10  ;;  %v541_v23 = vadd.f32 1.0, %v661_v0 }
 0x15f   : > { %v539_v1 = vadd.f32 1.0, %v659_v12  ;;  %v486_v59 = vadd.f32 %v710_v61, %v485_v15  ;;  %v544_v3 = vmul.f32 %v541_v23, %v415_v26 }
 0x161   : > { %v542_v18 = vmul.f32 %v539_v1, %v413_v17  ;;  %v490_v20 = vsel %vm489_vm3, %v710_v61, %v486_v59  ;;  %547 = vst [vmem:[%s277_s27 + $0x10] sm:$0xff] %v544_v3 }
 0x162   : > { %v495_v21 = vsel %vm492_vm4, %v494_v31, %v490_v20 }
 0x163   : > { %545 = vst [vmem:[%s277_s27] sm:$0xff] %v542_v18  ;;  %v496_v22 = vmul.f32 %v495_v21, %v471_v19 }
 0x165   : > { %v660_v32 = vclamps-f32 %v496_v22, 1.0 }
 0x167   : > { %v540_v25 = vadd.f32 1.0, %v660_v32 }
 0x169   : > { %v543_v27 = vmul.f32 %v540_v25, %v414_v24 }
 0x16b   : > { %546 = vst [vmem:[%s277_s27 + $0x8] sm:$0xff] %v543_v27 }
 0x16c PF: > { %s15_s20 = sadd.s32 1, %s733_s20   ;;  %s955_s18 = smov %s729_s19 }
 0x16d   : > { %p12_p5 = scmp.ge.s32.totalorder %s15_s20, 4   ;;  %s956_s19 = smov %s958_s21 }
 0x16f   :  { %14 = sbr.rel (!%p12_p5) target bundleno = 2 (0x2), region = 76 }

// kernel: vit_forward.17
= control target key start
LH: loop header
LB: loop body
LE: loop exit
PB: predicated region body
PF: predicated region fallthrough
CT: control target
= control target key end

     0   :  { %s624_s15 = smov 0   ;;  %s626_s16 = smov 0   ;;  %s714_s0 = inlined_call_operand.vmem [shape: f32[48,128], index: 0, kind: input, shape index: {}]   ;;  %s715_s1 = inlined_call_operand.vmem [shape: f32[128,128], index: 1, kind: input, shape index: {}]   ;;  %s716_s2 = inlined_call_operand.vmem [shape: f32[1,128], index: 2, kind: input, shape index: {}]   ;;  %s717_s3 = inlined_call_operand.vmem [shape: f32[48,128], index: 3, kind: input, shape index: {}]   ;;  %s718_s4 = inlined_call_operand.vmem [shape: f32[48,128], index: 4, kind: output, shape index: {}]  }
   0x1   :  { %s628_s17 = smov 0  }
   0x2 LB: > { %s33_s18 = sadd.s32 1, %s593_s16  ;;  %p536_p0 = scmp.ge.s32.totalorder %s597_s17, 1  ;;  %s597_s17 = sphi %s628_s17, %s14_s17   ;;  %s593_s16 = sphi %s626_s16, %s720_s16   ;;  %s589_s15 = sphi %s624_s15, %s719_s15  }
   0x3   : > { %p35_p1 = scmp.ge.s32.totalorder %s33_s18, 2  ;;  %p229_p2 = scmp.lt.s32.totalorder %s597_s17, 3 }
   0x5   : > { %s722_s18 = smov (%p35_p1, %s33_s18), 0  ;;  %p230_p3 = pnand %p536_p0, %p229_p2 }
   0x6   : > { %s280_s9 = smul.u32 (!%p230_p3), 3, %s589_s15 }
   0x7   : > { %233 = sbr.rel (%p230_p3) target bundleno = 185 (0xb9), region = 36 }
   0x8   : > { %p281_p4 = scmp.lt.s32.totalorder (!%p230_p3), %s280_s9, 5 }
   0xc   : > { %v348_v0 = vld [vmem:[%s715_s1 + $0x70] sm:$0xff]  ;;  %v349_v1 = vld [vmem:[%s715_s1 + $0x78] sm:$0xff]  ;;  %v346_v2 = vld [vmem:[%s715_s1 + $0x60] sm:$0xff]  ;;  %s724_s9 = smov (!%p281_p4, %s280_s9), 5 }
   0xd   : > { %v357_v3 = vpack.c.bf16 %v349_v1, %v348_v0  ;;  %v347_v4 = vld [vmem:[%s715_s1 + $0x68] sm:$0xff]  ;;  %v344_v6 = vld [vmem:[%s715_s1 + $0x50] sm:$0xff]  ;;  %v345_v7 = vld [vmem:[%s715_s1 + $0x58] sm:$0xff]  ;;  %s537_s25 = sshll.u32 %s724_s9, 3 }
   0xe   : > { %v356_v5 = vpack.c.bf16 %v347_v4, %v346_v2  ;;  %v355_v8 = vpack.c.bf16 %v345_v7, %v344_v6  ;;  %v342_v9 = vld [vmem:[%s715_s1 + $0x40] sm:$0xff]  ;;  %v343_v10 = vld [vmem:[%s715_s1 + $0x48] sm:$0xff]  ;;  %v340_v12 = vld [vmem:[%s715_s1 + $0x30] sm:$0xff]  ;;  %s287_s6 = scalar_lea.vmem %s714_s0, %s537_s25  ;;  %s308_s9 = scalar_lea.vmem %s717_s3, %s537_s25 }
   0xf   : > { %358 = vmatpush.bf16.msra.mxu0 %v357_v3  ;;  %542 = vmatpush.bf16.msra.mxu1 %v357_v3  ;;  %v354_v11 = vpack.c.bf16 %v343_v10, %v342_v9  ;;  %v341_v13 = vld [vmem:[%s715_s1 + $0x38] sm:$0xff]  ;;  %v338_v15 = vld [vmem:[%s715_s1 + $0x20] sm:$0xff]  ;;  %v339_v16 = vld [vmem:[%s715_s1 + $0x28] sm:$0xff]  ;;  %s317_s14 = scalar_lea.vmem %s718_s4, %s537_s25 }
  0x10   : > { %v353_v14 = vpack.c.bf16 %v341_v13, %v340_v12  ;;  %v352_v17 = vpack.c.bf16 %v339_v16, %v338_v15  ;;  %v336_v18 = vld [vmem:[%s715_s1 + $0x10] sm:$0xff]  ;;  %v337_v19 = vld [vmem:[%s715_s1 + $0x18] sm:$0xff]  ;;  %v334_v21 = vld [vmem:[%s715_s1] sm:$0xff] }
  0x11   : > { %v351_v20 = vpack.c.bf16 %v337_v19, %v336_v18  ;;  %v335_v22 = vld [vmem:[%s715_s1 + $0x8] sm:$0xff]  ;;  %v329_v24 = vld [vmem:[%s287_s6] sm:$0xff]  ;;  %v331_v26 = vld [vmem:[%s287_s6 + $0x10] sm:$0xff] }
  0x12   : > { %v350_v23 = vpack.c.bf16 %v335_v22, %v334_v21  ;;  %v330_v25 = vld [vmem:[%s287_s6 + $0x8] sm:$0xff]  ;;  %v333_v28 = vpack.c.bf16 %v331_v26, %v331_v26  ;;  %v574_v29 = vld [vmem:[%s716_s2] ss:$0 sm:$0xff]  ;;  %v397_v39 = vld [vmem:[%s308_s9 + $0x10] sm:$0xff] }
  0x13   : > { %359 = vmatpush.bf16.msra.mxu0 %v356_v5  ;;  %543 = vmatpush.bf16.msra.mxu1 %v356_v5  ;;  %v332_v27 = vpack.c.bf16 %v330_v25, %v329_v24  ;;  %v395_v31 = vld [vmem:[%s308_s9] sm:$0xff]  ;;  %v396_v37 = vld [vmem:[%s308_s9 + $0x8] sm:$0xff] }
  0x17   : > { %360 = vmatpush.bf16.msra.mxu0 %v355_v8  ;;  %544 = vmatpush.bf16.msra.mxu1 %v355_v8 }
  0x1b   : > { %361 = vmatpush.bf16.msra.mxu0 %v354_v11  ;;  %545 = vmatpush.bf16.msra.mxu1 %v354_v11 }
  0x1f   : > { %362 = vmatpush.bf16.msra.mxu0 %v353_v14  ;;  %546 = vmatpush.bf16.msra.mxu1 %v353_v14 }
  0x23   : > { %363 = vmatpush.bf16.msra.mxu0 %v352_v17  ;;  %547 = vmatpush.bf16.msra.mxu1 %v352_v17 }
  0x27   : > { %364 = vmatpush.bf16.msra.mxu0 %v351_v20  ;;  %548 = vmatpush.bf16.msra.mxu1 %v351_v20 }
  0x2b   : > { %365 = vmatpush.bf16.msra.mxu0 %v350_v23  ;;  %549 = vmatpush.bf16.msra.mxu1 %v350_v23 }
  0x2e   : > { %366 = vmatmul.bf16.vlgmr.msra.gmra.mxu0 %v332_v27  ;;  %371 = vmatmul.bf16.vlgmr.msra.gmra.mxu1 %v333_v28 }
  0xab   : > { %v367_v30 = vpop.f32.mrf.mxu0  ;;  %v372_v32 = vpop.f32.mrf.mxu1 }
  0xac   : > { %v392_v33 = vadd.f32 %v574_v29, %v367_v30  ;;  %v394_v35 = vadd.f32 %v574_v29, %v372_v32 }
  0xae   : > { %v398_v34 = vadd.f32 %v395_v31, %v392_v33  ;;  %v400_v42 = vadd.f32 %v397_v39, %v394_v35 }
  0xb0   : > { %401 = vst [vmem:[%s317_s14] sm:$0xff] %v398_v34 }
  0xb1   : > { %403 = vst [vmem:[%s317_s14 + $0x10] sm:$0xff] %v400_v42 }
  0xb3   : > { %v369_v36 = vpop.f32.mrf.mxu0  ;;  %v374_v38 = vpop.f32.mrf.mxu1 }
  0xb4   : > { %v393_v40 = vadd.f32 %v574_v29, %v369_v36 }
  0xb6   : > { %v399_v41 = vadd.f32 %v396_v37, %v393_v40 }
  0xb8   : > { %402 = vst [vmem:[%s317_s14 + $0x8] sm:$0xff] %v399_v41 }
  0xb9 PF: > { %s14_s17 = sadd.s32 1, %s597_s17   ;;  %s719_s15 = smov %s593_s16 }
  0xba   : > { %p11_p5 = scmp.ge.s32.totalorder %s14_s17, 4   ;;  %s720_s16 = smov %s722_s18 }
  0xbc   :  { %13 = sbr.rel (!%p11_p5) target bundleno = 2 (0x2), region = 83 }

// kernel: vit_forward.23
= control target key start
LH: loop header
LB: loop body
LE: loop exit
PB: predicated region body
PF: predicated region fallthrough
CT: control target
= control target key end

     0   :  { %vm22_vm0 = vcmask 1041408   ;;  %s243_s0 = inlined_call_operand.vmem [shape: f32[2,128], index: 0, kind: input, shape index: {}]   ;;  %s244_s1 = inlined_call_operand.vmem [shape: f32[1,128], index: 1, kind: input, shape index: {}]   ;;  %s245_s2 = inlined_call_operand.vmem [shape: f32[1,128], index: 2, kind: input, shape index: {}]   ;;  %s246_s3 = inlined_call_operand.vmem [shape: f32[128,128], index: 3, kind: input, shape index: {}]   ;;  %s247_s4 = inlined_call_operand.vmem [shape: f32[1,128], index: 4, kind: input, shape index: {}]   ;;  %s248_s5 = inlined_call_operand.hbm [shape: f32[2,128], index: 5, kind: output, shape index: {}]  }
   0x1   :  { %v21_v0 = vld [vmem:[%s243_s0] sm:$0x3] }
   0x2   :  { %v23_v1 = vsel %vm22_vm0, %v21_v0, 0.0 }
   0x3   :  { %24 = vadd.xlane.f32.xlu0 %v23_v1 }
   0x4   :  { %10 = vsyncpa [#allocation3], 0  ;;  %v27_v2 = vmul.f32 %v21_v0, %v21_v0  ;;  %v73_v4 = vld [vmem:[%s246_s3 + $0x70] sm:$0xff]  ;;  %v74_v5 = vld [vmem:[%s246_s3 + $0x78] sm:$0xff]  ;;  %s149_s30 = smov [#allocation2]  }
   0x5   :  { %v82_v6 = vpack.c.bf16 %v74_v5, %v73_v4  ;;  %v71_v7 = vld [vmem:[%s246_s3 + $0x60] sm:$0xff]  ;;  %v72_v8 = vld [vmem:[%s246_s3 + $0x68] sm:$0xff]  ;;  %v69_v10 = vld [vmem:[%s246_s3 + $0x50] sm:$0xff]  ;;  %s106_s6 = sshll.u32 %s149_s30, 4  ;;  %s107_s6 = int_to_ptr.vmem [resolvable:$true] %s106_s6 }
   0x6   :  { %v28_v3 = vsel %vm22_vm0, %v27_v2, 0.0  ;;  %v81_v9 = vpack.c.bf16 %v72_v8, %v71_v7  ;;  %v70_v11 = vld [vmem:[%s246_s3 + $0x58] sm:$0xff]  ;;  %v67_v13 = vld [vmem:[%s246_s3 + $0x40] sm:$0xff]  ;;  %v68_v14 = vld [vmem:[%s246_s3 + $0x48] sm:$0xff] }
   0x7   :  { %87 = vmatpush.bf16.msra.mxu0 %v82_v6  ;;  %v80_v12 = vpack.c.bf16 %v70_v11, %v69_v10  ;;  %v79_v15 = vpack.c.bf16 %v68_v14, %v67_v13  ;;  %v65_v16 = vld [vmem:[%s246_s3 + $0x30] sm:$0xff]  ;;  %v66_v17 = vld [vmem:[%s246_s3 + $0x38] sm:$0xff]  ;;  %v63_v19 = vld [vmem:[%s246_s3 + $0x20] sm:$0xff] }
   0x8   :  { %v78_v18 = vpack.c.bf16 %v66_v17, %v65_v16  ;;  %v64_v20 = vld [vmem:[%s246_s3 + $0x28] sm:$0xff]  ;;  %v61_v22 = vld [vmem:[%s246_s3 + $0x10] sm:$0xff]  ;;  %v62_v23 = vld [vmem:[%s246_s3 + $0x18] sm:$0xff] }
   0x9   :  { %v77_v21 = vpack.c.bf16 %v64_v20, %v63_v19  ;;  %v76_v25 = vpack.c.bf16 %v62_v23, %v61_v22  ;;  %v59_v26 = vld [vmem:[%s246_s3] sm:$0xff]  ;;  %v60_v27 = vld [vmem:[%s246_s3 + $0x8] sm:$0xff] }
   0xa   :  { %v75_v28 = vpack.c.bf16 %v60_v27, %v59_v26  ;;  %v118_v43 = vld [vmem:[%s244_s1] ss:$0 sm:$0xff]  ;;  %s108_s1 = sshll.u32 %s248_s5, 4  ;;  %s109_s1 = int_to_ptr.hbm [resolvable:$true] %s108_s1 }
   0xb   :  { %29 = vadd.xlane.f32.xlu0 %v28_v3  ;;  %88 = vmatpush.bf16.msra.mxu0 %v81_v9  ;;  %v119_v46 = vld [vmem:[%s245_s2] ss:$0 sm:$0xff] }
   0xc   :  { %v120_v50 = vld [vmem:[%s247_s4] ss:$0 sm:$0xff] }
   0xf   :  { %89 = vmatpush.bf16.msra.mxu0 %v80_v12 }
  0x13   :  { %90 = vmatpush.bf16.msra.mxu0 %v79_v15 }
  0x17   :  { %91 = vmatpush.bf16.msra.mxu0 %v78_v18 }
  0x1b   :  { %92 = vmatpush.bf16.msra.mxu0 %v77_v21 }
  0x1f   :  { %93 = vmatpush.bf16.msra.mxu0 %v76_v25 }
  0x23   :  { %94 = vmatpush.bf16.msra.mxu0 %v75_v28 }
  0x76   :  { %v25_v24 = vpop.xlane.xlu0 %24 }
  0x77   :  { %v26_v29 = vmul.f32 0.03125, %v25_v24 }
  0x79   :  { %v32_v31 = vmul.f32 %v26_v29, %v26_v29  ;;  %v35_v42 = vsub.f32 %v21_v0, %v26_v29 }
  0x7e   :  { %v30_v30 = vpop.xlane.xlu0 %29 }
  0x7f   :  { %v31_v32 = vmul.f32 0.03125, %v30_v30 }
  0x81   :  { %v33_v33 = vsub.f32 %v31_v32, %v32_v31 }
  0x83   :  { %v34_v34 = vmax.f32 %v33_v33, 0.0 }
  0x85   :  { %v36_v35 = vadd.f32 1e-05, %v34_v34 }
  0x87   :  { %121 = vrsqrt.f32 %v36_v35  ;;  %vm43_vm2 = vweird.f32 %v36_v35 }
  0x8d   :  { %v122_v36 = vpop.eup %121 }
  0x8e   :  { %v38_v37 = vmul.f32 %v122_v36, %v36_v35  ;;  %vm44_vm1 = vweird.f32 %v122_v36 }
  0x8f   :  { %vm45_vm3 = vmor %vm43_vm2, %vm44_vm1 }
  0x90   :  { %v39_v38 = vmul.f32 %v122_v36, %v38_v37 }
  0x92   :  { %v40_v39 = vmul.f32 0.5, %v39_v38 }
  0x94   :  { %v41_v40 = vsub.f32 1.5, %v40_v39 }
  0x96   :  { %v42_v41 = vmul.f32 %v122_v36, %v41_v40 }
  0x98   :  { %v46_v44 = vsel %vm45_vm3, %v122_v36, %v42_v41 }
  0x99   :  { %v47_v45 = vmul.f32 %v46_v44, %v35_v42 }
  0x9b   :  { %v52_v47 = vmul.f32 %v118_v43, %v47_v45 }
  0x9d   :  { %v57_v48 = vadd.f32 %v119_v46, %v52_v47 }
  0x9f   :  { %v58_v49 = vpack.c.bf16 %v57_v48, %v57_v48 }
  0xa1   :  { %95 = vmatmul.bf16.vlgmr.msra.gmra.mxu0 %v58_v49 }
 0x11e   :  { %v96_v51 = vpop.f32.mrf.mxu0 }
 0x11f   :  { %v97_v52 = vadd.f32 %v120_v50, %v96_v51 }
 0x121   :  { %100 = vst [vmem:[#allocation2] sm:$0x3] %v97_v52 }
 0x122   :  { %111 = dma.vmem_to_hbm [thread:$0]  %s107_s6, 32, %s109_s1, [#allocation3]  }
 0x126   :  { %v98_v53 = vpop.f32.mrf.mxu0 }
 0x127   :  { %147 = dma.done.wait [#allocation3], 32  }
 0x128   :  { %148 = vsyncadd [#allocation3], 4294967264 }
 0x129   :  { %116 = vsyncpa [#allocation3], 1 }

</bundles_post_ra>
